<compile_context>
chip_gen: v5e
topology: v5e:2x2
jax: 0.10.0
libtpu: 0.0.40
codegen_flags: <defaults>
</compile_context>

<pallas_src>
import jax
import jax.numpy as jnp
from jax.experimental import pallas as pl
from jax.experimental.pallas import tpu as pltpu


LATENT_DIM = 20
HIDDEN_DIM = 400
OUTPUT_DIM = 784


def _round_up(x, m):
    return ((x + m - 1) // m) * m


def decoder_kernel(z_ref, w1_ref, b1_ref, w2_ref, b2_ref, o_ref):
    # fc1: bf16 MXU matmul, f32 accumulate; bias add + relu in f32.
    z_bf16 = z_ref[...].astype(jnp.bfloat16)
    h = jnp.dot(z_bf16, w1_ref[...], preferred_element_type=jnp.float32)
    h = jnp.maximum(h + b1_ref[...], 0.0)
    # fc2: cast activations to bf16 for the MXU, accumulate in f32.
    logits = jnp.dot(h.astype(jnp.bfloat16), w2_ref[...],
                     preferred_element_type=jnp.float32)
    logits = logits + b2_ref[...]
    # sigmoid(x) == 0.5*tanh(0.5*x) + 0.5 : one EUP op + a VPU fma (exact).
    o_ref[...] = (0.5 * jnp.tanh(0.5 * logits) + 0.5).astype(o_ref.dtype)


def prepare_decoder_params(w1, b1, w2, b2):
    """One-time layout/dtype prep (hoisted out of the per-call path).

    w1: [hidden, latent]  b1: [hidden]   w2: [out, hidden]   b2: [out]
    Hidden dim is zero-padded to a multiple of 128 lanes (400 -> 512);
    this is internal only and numerically exact.
    Returns (W1T bf16 [latent, hidden_pad], b1 f32 [1, hidden_pad],
             W2T bf16 [hidden_pad, out],    b2 f32 [1, out]).
    """
    w1 = jnp.asarray(w1, jnp.float32)
    b1 = jnp.asarray(b1, jnp.float32)
    w2 = jnp.asarray(w2, jnp.float32)
    b2 = jnp.asarray(b2, jnp.float32)
    hidden = w1.shape[0]
    pad = _round_up(hidden, 128) - hidden
    w1t = jnp.pad(w1.T, ((0, 0), (0, pad))).astype(jnp.bfloat16)   # [latent, hid_pad]
    b1p = jnp.pad(b1, (0, pad)).reshape(1, -1)                      # [1, hid_pad] f32
    w2t = jnp.pad(w2.T, ((0, pad), (0, 0))).astype(jnp.bfloat16)    # [hid_pad, out]
    b2p = b2.reshape(1, -1)                                         # [1, out]     f32
    return w1t, b1p, w2t, b2p


def decoder_forward(z, params, out_dtype=jnp.float32):
    """z: [B, latent] f32; params from prepare_decoder_params. Returns [B, out]."""
    w1t, b1, w2t, b2 = params
    B, latent = z.shape
    hidden_p = w1t.shape[1]
    out_dim = w2t.shape[1]

    # Batch tiling:
    #  * tiny batch  -> a single exact block (block shape == full dims, always legal)
    #  * larger batch -> aim for >= 2 grid steps (so the "parallel" axis splits
    #    across v7x's two TCs), tiles up to 512 rows to amortize per-step
    #    overhead.  No host-side padding; the last partial block is masked by
    #    Pallas on write, so out_shape is exactly (B, out_dim).
    if B <= 16:
        tm = B
    else:
        tm = min(512, _round_up(pl.cdiv(B, 2), 8))
    grid = (pl.cdiv(B, tm),)

    cost = pl.CostEstimate(
        flops=2 * B * (latent * hidden_p + hidden_p * out_dim),
        transcendentals=B * out_dim,                              # one tanh / elem
        bytes_accessed=(B * latent * 4                            # z (f32)
                        + w1t.size * 2 + w2t.size * 2             # bf16 weights
                        + b1.size * 4 + b2.size * 4
                        + B * out_dim * jnp.dtype(out_dtype).itemsize),
    )

    return pl.pallas_call(
        decoder_kernel,
        out_shape=jax.ShapeDtypeStruct((B, out_dim), out_dtype),
        grid=grid,
        in_specs=[
            pl.BlockSpec((tm, latent), lambda i: (i, 0)),          # z tile
            pl.BlockSpec((latent, hidden_p), lambda i: (0, 0)),    # W1T (resident)
            pl.BlockSpec((1, hidden_p), lambda i: (0, 0)),         # b1  (resident)
            pl.BlockSpec((hidden_p, out_dim), lambda i: (0, 0)),   # W2T (resident)
            pl.BlockSpec((1, out_dim), lambda i: (0, 0)),          # b2  (resident)
        ],
        out_specs=pl.BlockSpec((tm, out_dim), lambda i: (i, 0)),
        compiler_params=pltpu.CompilerParams(
            dimension_semantics=("parallel",),        # shards M across v7x TCs
            vmem_limit_bytes=32 * 1024 * 1024,        # explicit budget (~8 MB used)
        ),
        cost_estimate=cost,
    )(z, w1t, b1, w2t, b2)


def init_params(key, latent_dim=LATENT_DIM, hidden_dim=HIDDEN_DIM,
                output_dim=OUTPUT_DIM):
    """Deterministic init matching PyTorch nn.Linear default (uniform +/-1/sqrt(fan_in))."""
    k1, k2, k3, k4 = jax.random.split(key, 4)
    bound1 = 1.0 / (latent_dim ** 0.5)
    bound2 = 1.0 / (hidden_dim ** 0.5)
    w1 = jax.random.uniform(k1, (hidden_dim, latent_dim), jnp.float32, -bound1, bound1)
    b1 = jax.random.uniform(k2, (hidden_dim,), jnp.float32, -bound1, bound1)
    w2 = jax.random.uniform(k3, (output_dim, hidden_dim), jnp.float32, -bound2, bound2)
    b2 = jax.random.uniform(k4, (output_dim,), jnp.float32, -bound2, bound2)
    return w1, b1, w2, b2


def _reference(z, w1, b1, w2, b2):
    h = jnp.maximum(z @ w1.T + b1, 0.0)
    return jax.nn.sigmoid(h @ w2.T + b2)


if __name__ == "__main__":
    key = jax.random.PRNGKey(0)
    k_params, k_z1, k_z2 = jax.random.split(key, 3)

    w1, b1, w2, b2 = init_params(k_params)
    params = prepare_decoder_params(w1, b1, w2, b2)   # one-time layout/dtype prep

    # Small-batch path: single exact block.
    z_small = jax.random.normal(k_z1, (8, LATENT_DIM), jnp.float32)
    out_small = jax.block_until_ready(decoder_forward(z_small, params))
    ref_small = _reference(z_small, w1, b1, w2, b2)
    assert out_small.shape == (8, OUTPUT_DIM)
    assert jnp.allclose(out_small, ref_small, atol=2e-2), "mismatch (small batch)"

    # Larger, non-tile-multiple batch: 2-step parallel grid + masked partial
    # last block (no host-side pad / out[:B] slice any more).
    z_big = jax.random.normal(k_z2, (300, LATENT_DIM), jnp.float32)
    out_big = jax.block_until_ready(decoder_forward(z_big, params))
    ref_big = _reference(z_big, w1, b1, w2, b2)
    assert out_big.shape == (300, OUTPUT_DIM)
    assert jnp.allclose(out_big, ref_big, atol=2e-2), "mismatch (tiled batch)"

    # Optional bf16 output path (halves the dominant output HBM write).
    out_bf16 = jax.block_until_ready(
        decoder_forward(z_big, params, out_dtype=jnp.bfloat16))
    assert out_bf16.dtype == jnp.bfloat16
    assert jnp.allclose(out_bf16.astype(jnp.float32), ref_big, atol=2e-2), \
        "mismatch (bf16 output)"

    print("KERNEL_OK")
</pallas_src>

<mosaic_0001>
module attributes {stable_mosaic.version = 11 : i64} {
  func.func @decoder_kernel(%arg0: i32, %arg1: memref<8x20xf32, #tpu.memory_space<vmem>>, %arg2: memref<20x512xbf16, #tpu.memory_space<vmem>>, %arg3: memref<1x512xf32, #tpu.memory_space<vmem>>, %arg4: memref<512x784xbf16, #tpu.memory_space<vmem>>, %arg5: memref<1x784xf32, #tpu.memory_space<vmem>>, %arg6: memref<8x784xf32, #tpu.memory_space<vmem>>) attributes {dimension_semantics = [#tpu.dimension_semantics<parallel>], iteration_bounds = array<i64: 1>, scalar_prefetch = 0 : i64, scratch_operands = 0 : i64, tpu.core_type = #tpu.core_type<tc>, window_params = [{transform_indices = @transform_0, window_bounds = array<i64: 8, 20>}, {pipeline_mode = #tpu.pipeline_mode<synchronous>, transform_indices = @transform_1, window_bounds = array<i64: 20, 512>}, {pipeline_mode = #tpu.pipeline_mode<synchronous>, transform_indices = @transform_2, window_bounds = array<i64: 1, 512>}, {pipeline_mode = #tpu.pipeline_mode<synchronous>, transform_indices = @transform_3, window_bounds = array<i64: 512, 784>}, {pipeline_mode = #tpu.pipeline_mode<synchronous>, transform_indices = @transform_4, window_bounds = array<i64: 1, 784>}, {transform_indices = @transform_5, window_bounds = array<i64: 8, 784>}]} {
    %c0 = arith.constant 0 : index
    %c0_0 = arith.constant 0 : index
    %0 = vector.load %arg1[%c0, %c0_0] : memref<8x20xf32, #tpu.memory_space<vmem>>, vector<8x20xf32>
    %1 = arith.truncf %0 : vector<8x20xf32> to vector<8x20xbf16>
    %c0_1 = arith.constant 0 : index
    %c0_2 = arith.constant 0 : index
    %2 = vector.load %arg2[%c0_1, %c0_2] : memref<20x512xbf16, #tpu.memory_space<vmem>>, vector<20x512xbf16>
    %cst = arith.constant dense<0.000000e+00> : vector<8x512xf32>
    %3 = tpu.matmul %1, %2, %cst {dimension_numbers = #tpu.dot_dimension_numbers<[1], [0], [0], [1], [0, 0, 1, 1], [], []>} : vector<8x20xbf16>, vector<20x512xbf16>, vector<8x512xf32> -> vector<8x512xf32>
    %c0_3 = arith.constant 0 : index
    %c0_4 = arith.constant 0 : index
    %4 = vector.load %arg3[%c0_3, %c0_4] : memref<1x512xf32, #tpu.memory_space<vmem>>, vector<1x512xf32>
    %5 = vector.broadcast %4 : vector<1x512xf32> to vector<8x512xf32>
    %6 = arith.addf %3, %5 : vector<8x512xf32>
    %cst_5 = arith.constant 0.000000e+00 : f32
    %7 = vector.broadcast %cst_5 : f32 to vector<8x512xf32>
    %8 = arith.maximumf %6, %7 : vector<8x512xf32>
    %9 = arith.truncf %8 : vector<8x512xf32> to vector<8x512xbf16>
    %c0_6 = arith.constant 0 : index
    %c0_7 = arith.constant 0 : index
    %10 = vector.load %arg4[%c0_6, %c0_7] : memref<512x784xbf16, #tpu.memory_space<vmem>>, vector<512x784xbf16>
    %cst_8 = arith.constant dense<0.000000e+00> : vector<8x784xf32>
    %11 = tpu.matmul %9, %10, %cst_8 {dimension_numbers = #tpu.dot_dimension_numbers<[1], [0], [0], [1], [0, 0, 1, 1], [], []>} : vector<8x512xbf16>, vector<512x784xbf16>, vector<8x784xf32> -> vector<8x784xf32>
    %c0_9 = arith.constant 0 : index
    %c0_10 = arith.constant 0 : index
    %12 = vector.load %arg5[%c0_9, %c0_10] : memref<1x784xf32, #tpu.memory_space<vmem>>, vector<1x784xf32>
    %13 = vector.broadcast %12 : vector<1x784xf32> to vector<8x784xf32>
    %14 = arith.addf %11, %13 : vector<8x784xf32>
    %cst_11 = arith.constant 5.000000e-01 : f32
    %15 = vector.broadcast %cst_11 : f32 to vector<8x784xf32>
    %16 = arith.mulf %15, %14 : vector<8x784xf32>
    %17 = math.tanh %16 : vector<8x784xf32>
    %cst_12 = arith.constant 5.000000e-01 : f32
    %18 = vector.broadcast %cst_12 : f32 to vector<8x784xf32>
    %19 = arith.mulf %18, %17 : vector<8x784xf32>
    %cst_13 = arith.constant 5.000000e-01 : f32
    %20 = vector.broadcast %cst_13 : f32 to vector<8x784xf32>
    %21 = arith.addf %19, %20 : vector<8x784xf32>
    %c0_14 = arith.constant 0 : index
    %c0_15 = arith.constant 0 : index
    %22 = vector.load %arg6[%c0_14, %c0_15] : memref<8x784xf32, #tpu.memory_space<vmem>>, vector<8x784xf32>
    tpu.vector_store %arg6[%c0_14, %c0_15], %21 {strides = array<i32>} : memref<8x784xf32, #tpu.memory_space<vmem>>, vector<8x784xf32>,
    return
  }
  func.func @transform_0(%arg0: i32) -> (i32, i32) {
    %c0_i32 = arith.constant 0 : i32
    %c0_i32_0 = arith.constant 0 : i32
    return %arg0, %c0_i32 : i32, i32
  }
  func.func @transform_1(%arg0: i32) -> (i32, i32) {
    %c0_i32 = arith.constant 0 : i32
    %c0_i32_0 = arith.constant 0 : i32
    %c0_i32_1 = arith.constant 0 : i32
    return %c0_i32, %c0_i32_0 : i32, i32
  }
  func.func @transform_2(%arg0: i32) -> (i32, i32) {
    %c0_i32 = arith.constant 0 : i32
    %c0_i32_0 = arith.constant 0 : i32
    %c0_i32_1 = arith.constant 0 : i32
    return %c0_i32, %c0_i32_0 : i32, i32
  }
  func.func @transform_3(%arg0: i32) -> (i32, i32) {
    %c0_i32 = arith.constant 0 : i32
    %c0_i32_0 = arith.constant 0 : i32
    %c0_i32_1 = arith.constant 0 : i32
    return %c0_i32, %c0_i32_0 : i32, i32
  }
  func.func @transform_4(%arg0: i32) -> (i32, i32) {
    %c0_i32 = arith.constant 0 : i32
    %c0_i32_0 = arith.constant 0 : i32
    %c0_i32_1 = arith.constant 0 : i32
    return %c0_i32, %c0_i32_0 : i32, i32
  }
  func.func @transform_5(%arg0: i32) -> (i32, i32) {
    %c0_i32 = arith.constant 0 : i32
    %c0_i32_0 = arith.constant 0 : i32
    return %arg0, %c0_i32 : i32, i32
  }
}

</mosaic_0001>

<bundles_post_ra>
// kernel: tpu_custom_call.1
= control target key start
LH: loop header
LB: loop body
LE: loop exit
PB: predicated region body
PF: predicated region fallthrough
CT: control target
= control target key end

     0   :  { %vm74_vm0 = vcmask 1041408   ;;  %vm70_vm1 = vcmask 162816   ;;  %s4642_s0 = inlined_call_operand.vmem [shape: f32[8,20], index: 0, kind: input, shape index: {}]   ;;  %s4643_s1 = inlined_call_operand.vmem [shape: bf16[20,512], index: 1, kind: input, shape index: {}]   ;;  %s4644_s2 = inlined_call_operand.vmem [shape: f32[1,512], index: 2, kind: input, shape index: {}]   ;;  %s4645_s3 = inlined_call_operand.vmem [shape: bf16[512,784], index: 3, kind: input, shape index: {}]   ;;  %s4646_s4 = inlined_call_operand.vmem [shape: f32[1,784], index: 4, kind: input, shape index: {}]   ;;  %s4647_s5 = inlined_call_operand.hbm [shape: f32[8,784], index: 5, kind: output, shape index: {}]  }
   0x1   :  { %v28_v0 = vld [vmem:[%s4643_s1 + $0x20] sm:$0x33]  ;;  %v29_v1 = vld [vmem:[%s4643_s1 + $0x28] sm:$0x33]  ;;  %v2905_v7 = vld [vmem:[%s4643_s1 + $0xc] sm:$0xf0] }
   0x2   :  { %v54_v2 = vunpack.c.l.b16 %v28_v0  ;;  %v55_v3 = vunpack.c.h.b16 %v28_v0  ;;  %v56_v4 = vunpack.c.l.b16 %v29_v1  ;;  %v57_v5 = vunpack.c.h.b16 %v29_v1  ;;  %v1989_v6 = vld [vmem:[%s4643_s1] sm:$0xf]  ;;  %v2903_v8 = vld [vmem:[%s4643_s1 + $0x4] sm:$0xf]  ;;  %v1991_v9 = vld [vmem:[%s4643_s1 + $0x10] sm:$0xf0] }
   0x3   :  { %v1997_v10 = vld [vmem:[%s4643_s1 + $0x8] sm:$0xf]  ;;  %v2906_v15 = vld [vmem:[%s4643_s1 + $0x14] sm:$0xf0]  ;;  %v2904_v16 = vld [vmem:[%s4643_s1 + $0xc] sm:$0xf]  ;;  %v1990_v26 = vor.u32 %v2905_v7, %v1989_v6  ;;  %v1994_v27 = vor.u32 %v2903_v8, %v1991_v9 }
   0x4   :  { %v62_v11 = vpack.c.b16 %v54_v2, %v54_v2  ;;  %v63_v12 = vpack.c.b16 %v55_v3, %v55_v3  ;;  %v64_v13 = vpack.c.b16 %v56_v4, %v56_v4  ;;  %v65_v14 = vpack.c.b16 %v57_v5, %v57_v5  ;;  %v1999_v17 = vld [vmem:[%s4643_s1 + $0x18] sm:$0xf0]  ;;  %v2205_v18 = vld [vmem:[%s4645_s3 + $0x188] sm:$0xf]  ;;  %v2959_v19 = vld [vmem:[%s4645_s3 + $0x1a0] sm:$0xf0] }
   0x5   :  { %v2429_v20 = vld [vmem:[%s4645_s3 + $0x348] sm:$0xf]  ;;  %v3015_v25 = vld [vmem:[%s4645_s3 + $0x360] sm:$0xf0]  ;;  %v1998_v29 = vor.u32 %v2906_v15, %v1997_v10  ;;  %v2002_v30 = vor.u32 %v2904_v16, %v1999_v17  ;;  %v2177_v31 = vld [vmem:[%s4645_s3 + $0x150] sm:$0xf]  ;;  %v2206_v33 = vor.u32 %v2959_v19, %v2205_v18 }
   0x6   :  { %v76_v21 = vsel %vm74_vm0, %v62_v11, 0  ;;  %v79_v22 = vsel %vm74_vm0, %v63_v12, 0  ;;  %v82_v23 = vsel %vm74_vm0, %v64_v13, 0  ;;  %v85_v24 = vsel %vm74_vm0, %v65_v14, 0  ;;  %v22_v28 = vld [vmem:[%s4642_s0] sm:$0xff] }
   0x7   :  { %93 = vmatpush.bf16.msra.mxu0 %v76_v21  ;;  %106 = vmatpush.bf16.msra.mxu1 %v79_v22  ;;  %v2653_v32 = vld [vmem:[%s4645_s3 + $0x508] sm:$0xf]  ;;  %v2430_v34 = vor.u32 %v3015_v25, %v2429_v20  ;;  %v3071_v35 = vld [vmem:[%s4645_s3 + $0x520] sm:$0xf0]  ;;  %v23_v38 = vpack.c.bf16 %v22_v28, %v22_v28  ;;  %v2952_v39 = vld [vmem:[%s4645_s3 + $0x168] sm:$0xf0] }
   0x8   :  { %119 = vmatpush.bf16.msra.mxu2 %v82_v23  ;;  %132 = vmatpush.bf16.msra.mxu3 %v85_v24  ;;  %v2877_v36 = vld [vmem:[%s4645_s3 + $0x6c8] sm:$0xf]  ;;  %v3127_v37 = vld [vmem:[%s4645_s3 + $0x6e0] sm:$0xf0]  ;;  %v2401_v40 = vld [vmem:[%s4645_s3 + $0x310] sm:$0xf]  ;;  %v2654_v42 = vor.u32 %v3071_v35, %v2653_v32  ;;  %v2178_v46 = vor.u32 %v2952_v39, %v2177_v31 }
   0x9   :  { %v3008_v41 = vld [vmem:[%s4645_s3 + $0x328] sm:$0xf0]  ;;  %v2878_v43 = vor.u32 %v3127_v37, %v2877_v36  ;;  %v2149_v44 = vld [vmem:[%s4645_s3 + $0x118] sm:$0xf]  ;;  %v2625_v45 = vld [vmem:[%s4645_s3 + $0x4d0] sm:$0xf] }
   0xa   :  { %v2402_v47 = vor.u32 %v3008_v41, %v2401_v40  ;;  %v3064_v48 = vld [vmem:[%s4645_s3 + $0x4e8] sm:$0xf0]  ;;  %v2849_v49 = vld [vmem:[%s4645_s3 + $0x690] sm:$0xf]  ;;  %v2945_v51 = vld [vmem:[%s4645_s3 + $0x130] sm:$0xf0] }
   0xb   :  { %94 = vmatpush.bf16.msra.mxu0 %v1990_v26  ;;  %107 = vmatpush.bf16.msra.mxu1 %v1994_v27  ;;  %v3120_v50 = vld [vmem:[%s4645_s3 + $0x6a8] sm:$0xf0]  ;;  %v2373_v52 = vld [vmem:[%s4645_s3 + $0x2d8] sm:$0xf]  ;;  %v3001_v53 = vld [vmem:[%s4645_s3 + $0x2f0] sm:$0xf0]  ;;  %v2626_v54 = vor.u32 %v3064_v48, %v2625_v45  ;;  %v2150_v58 = vor.u32 %v2945_v51, %v2149_v44 }
   0xc   :  { %120 = vmatpush.bf16.msra.mxu2 %v1998_v29  ;;  %133 = vmatpush.bf16.msra.mxu3 %v2002_v30  ;;  %v2850_v55 = vor.u32 %v3120_v50, %v2849_v49  ;;  %v2121_v56 = vld [vmem:[%s4645_s3 + $0xe0] sm:$0xf]  ;;  %v2597_v57 = vld [vmem:[%s4645_s3 + $0x498] sm:$0xf]  ;;  %v2374_v59 = vor.u32 %v3001_v53, %v2373_v52  ;;  %v3057_v60 = vld [vmem:[%s4645_s3 + $0x4b0] sm:$0xf0] }
   0xd   :  { %v2821_v61 = vld [vmem:[%s4645_s3 + $0x658] sm:$0xf]  ;;  %v3113_v62 = vld [vmem:[%s4645_s3 + $0x670] sm:$0xf0]  ;;  %v2938_v63 = vld [vmem:[%s4645_s3 + $0xf8] sm:$0xf0]  ;;  %v2598_v2 = vor.u32 %v3057_v60, %v2597_v57 }
   0xe   :  { %2003 = vmatmul.msk.bf16.vlgmr.msra.gmra.mxu0 %vm70_vm1, %v23_v38  ;;  %2004 = vmatmul.msk.bf16.vlgmr.msra.gmra.mxu1 %vm70_vm1, %v23_v38  ;;  %v2345_v0 = vld [vmem:[%s4645_s3 + $0x2a0] sm:$0xf]  ;;  %v2994_v1 = vld [vmem:[%s4645_s3 + $0x2b8] sm:$0xf0]  ;;  %v2822_v3 = vor.u32 %v3113_v62, %v2821_v61  ;;  %v2093_v4 = vld [vmem:[%s4645_s3 + $0xa8] sm:$0xf]  ;;  %v2122_v6 = vor.u32 %v2938_v63, %v2121_v56 }
   0xf   :  { %1571 = vmatpush.bf16.msrb.mxu0 %v2206_v33  ;;  %1584 = vmatpush.bf16.msrb.mxu1 %v2430_v34  ;;  %v2569_v5 = vld [vmem:[%s4645_s3 + $0x460] sm:$0xf]  ;;  %v2346_v7 = vor.u32 %v2994_v1, %v2345_v0  ;;  %v3050_v8 = vld [vmem:[%s4645_s3 + $0x478] sm:$0xf0]  ;;  %v2931_v11 = vld [vmem:[%s4645_s3 + $0xc0] sm:$0xf0] }
  0x10   :  { %2005 = vmatmul.msk.bf16.vlgmr.msra.gmra.mxu2 %vm70_vm1, %v23_v38  ;;  %2006 = vmatmul.msk.bf16.vlgmr.msra.gmra.mxu3 %vm70_vm1, %v23_v38  ;;  %v2793_v9 = vld [vmem:[%s4645_s3 + $0x620] sm:$0xf]  ;;  %v3106_v10 = vld [vmem:[%s4645_s3 + $0x638] sm:$0xf0]  ;;  %v2317_v12 = vld [vmem:[%s4645_s3 + $0x268] sm:$0xf]  ;;  %v2570_v14 = vor.u32 %v3050_v8, %v2569_v5  ;;  %v2094_v18 = vor.u32 %v2931_v11, %v2093_v4 }
  0x11   :  { %1597 = vmatpush.bf16.msrb.mxu2 %v2654_v42  ;;  %1610 = vmatpush.bf16.msrb.mxu3 %v2878_v43  ;;  %v2987_v13 = vld [vmem:[%s4645_s3 + $0x280] sm:$0xf0]  ;;  %v2794_v15 = vor.u32 %v3106_v10, %v2793_v9  ;;  %v2065_v16 = vld [vmem:[%s4645_s3 + $0x70] sm:$0xf]  ;;  %v2541_v17 = vld [vmem:[%s4645_s3 + $0x428] sm:$0xf] }
  0x12   :  { %v2318_v19 = vor.u32 %v2987_v13, %v2317_v12  ;;  %v3043_v20 = vld [vmem:[%s4645_s3 + $0x440] sm:$0xf0]  ;;  %v2765_v21 = vld [vmem:[%s4645_s3 + $0x5e8] sm:$0xf]  ;;  %v2924_v23 = vld [vmem:[%s4645_s3 + $0x88] sm:$0xf0] }
  0x13   :  { %1572 = vmatpush.bf16.msrb.mxu0 %v2178_v46  ;;  %1585 = vmatpush.bf16.msrb.mxu1 %v2402_v47  ;;  %v3099_v22 = vld [vmem:[%s4645_s3 + $0x600] sm:$0xf0]  ;;  %v2289_v24 = vld [vmem:[%s4645_s3 + $0x230] sm:$0xf]  ;;  %v2980_v25 = vld [vmem:[%s4645_s3 + $0x248] sm:$0xf0]  ;;  %v2542_v26 = vor.u32 %v3043_v20, %v2541_v17  ;;  %v2066_v30 = vor.u32 %v2924_v23, %v2065_v16 }
  0x14   :  { %v2766_v27 = vor.u32 %v3099_v22, %v2765_v21  ;;  %v2037_v28 = vld [vmem:[%s4645_s3 + $0x38] sm:$0xf]  ;;  %v2513_v29 = vld [vmem:[%s4645_s3 + $0x3f0] sm:$0xf]  ;;  %v2290_v31 = vor.u32 %v2980_v25, %v2289_v24  ;;  %v3036_v32 = vld [vmem:[%s4645_s3 + $0x408] sm:$0xf0] }
  0x15   :  { %1598 = vmatpush.bf16.msrb.mxu2 %v2626_v54  ;;  %1611 = vmatpush.bf16.msrb.mxu3 %v2850_v55  ;;  %v2737_v33 = vld [vmem:[%s4645_s3 + $0x5b0] sm:$0xf]  ;;  %v3092_v34 = vld [vmem:[%s4645_s3 + $0x5c8] sm:$0xf0]  ;;  %v2917_v35 = vld [vmem:[%s4645_s3 + $0x50] sm:$0xf0]  ;;  %v2514_v38 = vor.u32 %v3036_v32, %v2513_v29 }
  0x16   :  { %v2261_v36 = vld [vmem:[%s4645_s3 + $0x1f8] sm:$0xf]  ;;  %v2973_v37 = vld [vmem:[%s4645_s3 + $0x210] sm:$0xf0]  ;;  %v2738_v39 = vor.u32 %v3092_v34, %v2737_v33  ;;  %v2009_v40 = vld [vmem:[%s4645_s3] sm:$0xf]  ;;  %v2038_v43 = vor.u32 %v2917_v35, %v2037_v28 }
  0x17   :  { %1573 = vmatpush.bf16.msrb.mxu0 %v2150_v58  ;;  %1586 = vmatpush.bf16.msrb.mxu1 %v2374_v59  ;;  %v2910_v41 = vld [vmem:[%s4645_s3 + $0x18] sm:$0xf0]  ;;  %v2485_v42 = vld [vmem:[%s4645_s3 + $0x3b8] sm:$0xf]  ;;  %v2262_v44 = vor.u32 %v2973_v37, %v2261_v36  ;;  %v3029_v45 = vld [vmem:[%s4645_s3 + $0x3d0] sm:$0xf0] }
  0x18   :  { %v2709_v46 = vld [vmem:[%s4645_s3 + $0x578] sm:$0xf]  ;;  %v3085_v47 = vld [vmem:[%s4645_s3 + $0x590] sm:$0xf0]  ;;  %v2233_v48 = vld [vmem:[%s4645_s3 + $0x1c0] sm:$0xf]  ;;  %v2486_v54 = vor.u32 %v3029_v45, %v2485_v42  ;;  %v2010_v58 = vor.u32 %v2910_v41, %v2009_v40 }
  0x19   :  { %1599 = vmatpush.bf16.msrb.mxu2 %v2598_v2  ;;  %1612 = vmatpush.bf16.msrb.mxu3 %v2822_v3  ;;  %v2966_v49 = vld [vmem:[%s4645_s3 + $0x1d8] sm:$0xf0]  ;;  %v2956_v50 = vld [vmem:[%s4645_s3 + $0x18c] sm:$0xf]  ;;  %v2207_v51 = vld [vmem:[%s4645_s3 + $0x1a4] sm:$0xf0]  ;;  %v2710_v55 = vor.u32 %v3085_v47, %v2709_v46 }
  0x1a   :  { %v3012_v52 = vld [vmem:[%s4645_s3 + $0x34c] sm:$0xf]  ;;  %v2431_v53 = vld [vmem:[%s4645_s3 + $0x364] sm:$0xf0]  ;;  %v2457_v56 = vld [vmem:[%s4645_s3 + $0x380] sm:$0xf]  ;;  %v2234_v59 = vor.u32 %v2966_v49, %v2233_v48  ;;  %v2210_v0 = vor.u32 %v2956_v50, %v2207_v51 }
  0x1b   :  { %1574 = vmatpush.bf16.msrb.mxu0 %v2122_v6  ;;  %1587 = vmatpush.bf16.msrb.mxu1 %v2346_v7  ;;  %v3022_v57 = vld [vmem:[%s4645_s3 + $0x398] sm:$0xf0]  ;;  %v2949_v60 = vld [vmem:[%s4645_s3 + $0x154] sm:$0xf]  ;;  %v2681_v61 = vld [vmem:[%s4645_s3 + $0x540] sm:$0xf]  ;;  %v2434_v1 = vor.u32 %v3012_v52, %v2431_v53 }
  0x1c   :  { %v3078_v62 = vld [vmem:[%s4645_s3 + $0x558] sm:$0xf0]  ;;  %v3068_v63 = vld [vmem:[%s4645_s3 + $0x50c] sm:$0xf]  ;;  %v2655_v2 = vld [vmem:[%s4645_s3 + $0x524] sm:$0xf0]  ;;  %v2458_v8 = vor.u32 %v3022_v57, %v2457_v56 }
  0x1d   :  { %1600 = vmatpush.bf16.msrb.mxu2 %v2570_v14  ;;  %1613 = vmatpush.bf16.msrb.mxu3 %v2794_v15  ;;  %v3124_v3 = vld [vmem:[%s4645_s3 + $0x6cc] sm:$0xf]  ;;  %v2879_v4 = vld [vmem:[%s4645_s3 + $0x6e4] sm:$0xf0]  ;;  %v2179_v5 = vld [vmem:[%s4645_s3 + $0x16c] sm:$0xf0]  ;;  %v2682_v9 = vor.u32 %v3078_v62, %v2681_v61 }
  0x1e   :  { %v3005_v6 = vld [vmem:[%s4645_s3 + $0x314] sm:$0xf]  ;;  %v2403_v7 = vld [vmem:[%s4645_s3 + $0x32c] sm:$0xf0] }
  0x1f   :  { %1575 = vmatpush.bf16.msrb.mxu0 %v2094_v18  ;;  %1588 = vmatpush.bf16.msrb.mxu1 %v2318_v19 }
  0x21   :  { %1601 = vmatpush.bf16.msrb.mxu2 %v2542_v26  ;;  %1614 = vmatpush.bf16.msrb.mxu3 %v2766_v27 }
  0x23   :  { %1576 = vmatpush.bf16.msrb.mxu0 %v2066_v30  ;;  %1589 = vmatpush.bf16.msrb.mxu1 %v2290_v31 }
  0x25   :  { %1602 = vmatpush.bf16.msrb.mxu2 %v2514_v38  ;;  %1615 = vmatpush.bf16.msrb.mxu3 %v2738_v39 }
  0x27   :  { %1577 = vmatpush.bf16.msrb.mxu0 %v2038_v43  ;;  %1590 = vmatpush.bf16.msrb.mxu1 %v2262_v44 }
  0x29   :  { %1603 = vmatpush.bf16.msrb.mxu2 %v2486_v54  ;;  %1616 = vmatpush.bf16.msrb.mxu3 %v2710_v55 }
  0x2a   :  { %10 = vsyncpa [#allocation3], 0  ;;  %v2658_v10 = vor.u32 %v3068_v63, %v2655_v2  ;;  %v2882_v11 = vor.u32 %v3124_v3, %v2879_v4  ;;  %v2942_v12 = vld [vmem:[%s4645_s3 + $0x11c] sm:$0xf]  ;;  %v3061_v13 = vld [vmem:[%s4645_s3 + $0x4d4] sm:$0xf]  ;;  %v2182_v14 = vor.u32 %v2949_v60, %v2179_v5  ;;  %v2406_v15 = vor.u32 %v3005_v6, %v2403_v7 }
  0x2b   :  { %1578 = vmatpush.bf16.msrb.mxu0 %v2010_v58  ;;  %1591 = vmatpush.bf16.msrb.mxu1 %v2234_v59  ;;  %v2627_v16 = vld [vmem:[%s4645_s3 + $0x4ec] sm:$0xf0]  ;;  %v3117_v17 = vld [vmem:[%s4645_s3 + $0x694] sm:$0xf]  ;;  %v2151_v19 = vld [vmem:[%s4645_s3 + $0x134] sm:$0xf0] }
  0x2c   :  { %v2851_v18 = vld [vmem:[%s4645_s3 + $0x6ac] sm:$0xf0]  ;;  %v2998_v20 = vld [vmem:[%s4645_s3 + $0x2dc] sm:$0xf]  ;;  %v2375_v21 = vld [vmem:[%s4645_s3 + $0x2f4] sm:$0xf0]  ;;  %v2630_v22 = vor.u32 %v3061_v13, %v2627_v16  ;;  %v2154_v26 = vor.u32 %v2942_v12, %v2151_v19 }
  0x2d   :  { %1604 = vmatpush.bf16.msrb.mxu2 %v2458_v8  ;;  %1617 = vmatpush.bf16.msrb.mxu3 %v2682_v9  ;;  %v2854_v23 = vor.u32 %v3117_v17, %v2851_v18  ;;  %v2935_v24 = vld [vmem:[%s4645_s3 + $0xe4] sm:$0xf]  ;;  %v3054_v25 = vld [vmem:[%s4645_s3 + $0x49c] sm:$0xf]  ;;  %v2378_v27 = vor.u32 %v2998_v20, %v2375_v21  ;;  %v2599_v28 = vld [vmem:[%s4645_s3 + $0x4b4] sm:$0xf0] }
  0x2e   :  { %v3110_v29 = vld [vmem:[%s4645_s3 + $0x65c] sm:$0xf]  ;;  %v2823_v30 = vld [vmem:[%s4645_s3 + $0x674] sm:$0xf0]  ;;  %v2123_v31 = vld [vmem:[%s4645_s3 + $0xfc] sm:$0xf0]  ;;  %v2602_v34 = vor.u32 %v3054_v25, %v2599_v28 }
  0x2f   :  { %1623 = vmatpush.bf16.msra.mxu0 %v2210_v0  ;;  %1636 = vmatpush.bf16.msra.mxu1 %v2434_v1  ;;  %v2991_v32 = vld [vmem:[%s4645_s3 + $0x2a4] sm:$0xf]  ;;  %v2347_v33 = vld [vmem:[%s4645_s3 + $0x2bc] sm:$0xf0]  ;;  %v2826_v35 = vor.u32 %v3110_v29, %v2823_v30  ;;  %v2928_v36 = vld [vmem:[%s4645_s3 + $0xac] sm:$0xf]  ;;  %v2126_v38 = vor.u32 %v2935_v24, %v2123_v31 }
  0x30   :  { %v3047_v37 = vld [vmem:[%s4645_s3 + $0x464] sm:$0xf]  ;;  %v2350_v39 = vor.u32 %v2991_v32, %v2347_v33  ;;  %v2571_v40 = vld [vmem:[%s4645_s3 + $0x47c] sm:$0xf0]  ;;  %v2095_v43 = vld [vmem:[%s4645_s3 + $0xc4] sm:$0xf0] }
  0x31   :  { %1649 = vmatpush.bf16.msra.mxu2 %v2658_v10  ;;  %1662 = vmatpush.bf16.msra.mxu3 %v2882_v11  ;;  %v3103_v41 = vld [vmem:[%s4645_s3 + $0x624] sm:$0xf]  ;;  %v2795_v42 = vld [vmem:[%s4645_s3 + $0x63c] sm:$0xf0]  ;;  %v2984_v44 = vld [vmem:[%s4645_s3 + $0x26c] sm:$0xf]  ;;  %v2574_v46 = vor.u32 %v3047_v37, %v2571_v40  ;;  %v2098_v48 = vor.u32 %v2928_v36, %v2095_v43 }
  0x32   :  { %v2319_v45 = vld [vmem:[%s4645_s3 + $0x284] sm:$0xf0]  ;;  %v2798_v47 = vor.u32 %v3103_v41, %v2795_v42  ;;  %v2921_v50 = vld [vmem:[%s4645_s3 + $0x74] sm:$0xf]  ;;  %v2067_v51 = vld [vmem:[%s4645_s3 + $0x8c] sm:$0xf0] }
  0x33   :  { %1624 = vmatpush.bf16.msra.mxu0 %v2182_v14  ;;  %1637 = vmatpush.bf16.msra.mxu1 %v2406_v15  ;;  %v2322_v49 = vor.u32 %v2984_v44, %v2319_v45  ;;  %v2977_v52 = vld [vmem:[%s4645_s3 + $0x234] sm:$0xf]  ;;  %v2291_v53 = vld [vmem:[%s4645_s3 + $0x24c] sm:$0xf0]  ;;  %v2070_v54 = vor.u32 %v2921_v50, %v2067_v51  ;;  %v3040_v56 = vld [vmem:[%s4645_s3 + $0x42c] sm:$0xf] }
  0x34   :  { %v2294_v55 = vor.u32 %v2977_v52, %v2291_v53  ;;  %v2543_v57 = vld [vmem:[%s4645_s3 + $0x444] sm:$0xf0]  ;;  %v3096_v58 = vld [vmem:[%s4645_s3 + $0x5ec] sm:$0xf]  ;;  %v2914_v62 = vld [vmem:[%s4645_s3 + $0x3c] sm:$0xf] }
  0x35   :  { %1650 = vmatpush.bf16.msra.mxu2 %v2630_v22  ;;  %1663 = vmatpush.bf16.msra.mxu3 %v2854_v23  ;;  %v2546_v59 = vor.u32 %v3040_v56, %v2543_v57  ;;  %v2767_v60 = vld [vmem:[%s4645_s3 + $0x604] sm:$0xf0]  ;;  %v2039_v63 = vld [vmem:[%s4645_s3 + $0x54] sm:$0xf0]  ;;  %v2970_v1 = vld [vmem:[%s4645_s3 + $0x1fc] sm:$0xf] }
  0x36   :  { %v2770_v61 = vor.u32 %v3096_v58, %v2767_v60  ;;  %v2042_v0 = vor.u32 %v2914_v62, %v2039_v63  ;;  %v2263_v2 = vld [vmem:[%s4645_s3 + $0x214] sm:$0xf0]  ;;  %v3033_v4 = vld [vmem:[%s4645_s3 + $0x3f4] sm:$0xf]  ;;  %v2515_v5 = vld [vmem:[%s4645_s3 + $0x40c] sm:$0xf0] }
  0x37   :  { %1625 = vmatpush.bf16.msra.mxu0 %v2154_v26  ;;  %1638 = vmatpush.bf16.msra.mxu1 %v2378_v27  ;;  %v2266_v3 = vor.u32 %v2970_v1, %v2263_v2  ;;  %v3089_v6 = vld [vmem:[%s4645_s3 + $0x5b4] sm:$0xf]  ;;  %v2518_v7 = vor.u32 %v3033_v4, %v2515_v5  ;;  %v2739_v8 = vld [vmem:[%s4645_s3 + $0x5cc] sm:$0xf0]  ;;  %v2907_v10 = vld [vmem:[%s4645_s3 + $0x4] sm:$0xf] }
  0x38   :  { %v2742_v9 = vor.u32 %v3089_v6, %v2739_v8  ;;  %v2011_v11 = vld [vmem:[%s4645_s3 + $0x1c] sm:$0xf0]  ;;  %v2963_v12 = vld [vmem:[%s4645_s3 + $0x1c4] sm:$0xf]  ;;  %v3026_v16 = vld [vmem:[%s4645_s3 + $0x3bc] sm:$0xf] }
  0x39   :  { %1651 = vmatpush.bf16.msra.mxu2 %v2602_v34  ;;  %1664 = vmatpush.bf16.msra.mxu3 %v2826_v35  ;;  %v2014_v13 = vor.u32 %v2907_v10, %v2011_v11  ;;  %v2235_v14 = vld [vmem:[%s4645_s3 + $0x1dc] sm:$0xf0]  ;;  %v2487_v17 = vld [vmem:[%s4645_s3 + $0x3d4] sm:$0xf0]  ;;  %v3082_v19 = vld [vmem:[%s4645_s3 + $0x57c] sm:$0xf] }
  0x3a   :  { %v2238_v15 = vor.u32 %v2963_v12, %v2235_v14  ;;  %v2490_v18 = vor.u32 %v3026_v16, %v2487_v17  ;;  %v2711_v20 = vld [vmem:[%s4645_s3 + $0x594] sm:$0xf0]  ;;  %v3019_v22 = vld [vmem:[%s4645_s3 + $0x384] sm:$0xf]  ;;  %v2459_v23 = vld [vmem:[%s4645_s3 + $0x39c] sm:$0xf0] }
  0x3b   :  { %1626 = vmatpush.bf16.msra.mxu0 %v2126_v38  ;;  %1639 = vmatpush.bf16.msra.mxu1 %v2350_v39  ;;  %v2714_v21 = vor.u32 %v3082_v19, %v2711_v20  ;;  %v2462_v24 = vor.u32 %v3019_v22, %v2459_v23  ;;  %v3075_v25 = vld [vmem:[%s4645_s3 + $0x544] sm:$0xf]  ;;  %v2683_v26 = vld [vmem:[%s4645_s3 + $0x55c] sm:$0xf0]  ;;  %v2213_v33 = vld [vmem:[%s4645_s3 + $0x190] sm:$0xf] }
  0x3c   :  { %v2686_v27 = vor.u32 %v3075_v25, %v2683_v26  ;;  %v30_v28 = vld [vmem:[%s4644_s2] sm:$0xf]  ;;  %v2960_v36 = vld [vmem:[%s4645_s3 + $0x1a8] sm:$0xf0]  ;;  %v2437_v37 = vld [vmem:[%s4645_s3 + $0x350] sm:$0xf] }
  0x3d   :  { %1652 = vmatpush.bf16.msra.mxu2 %v2574_v46  ;;  %1665 = vmatpush.bf16.msra.mxu3 %v2798_v47  ;;  %v32_v29 = vperm.slane %v30_v28, 0  ;;  %v33_v30 = vperm.slane %v30_v28, 1  ;;  %v3016_v38 = vld [vmem:[%s4645_s3 + $0x368] sm:$0xf0]  ;;  %v34_v41 = vperm.slane %v30_v28, 2  ;;  %v35_v42 = vperm.slane %v30_v28, 3 }
  0x3e   :  { %v2214_v43 = vor.u32 %v2960_v36, %v2213_v33  ;;  %v2438_v44 = vor.u32 %v3016_v38, %v2437_v37  ;;  %v2185_v45 = vld [vmem:[%s4645_s3 + $0x158] sm:$0xf]  ;;  %v2953_v46 = vld [vmem:[%s4645_s3 + $0x170] sm:$0xf0]  ;;  %v2885_v56 = vld [vmem:[%s4645_s3 + $0x6d0] sm:$0xf] }
  0x3f   :  { %1627 = vmatpush.bf16.msra.mxu0 %v2098_v48  ;;  %1640 = vmatpush.bf16.msra.mxu1 %v2322_v49  ;;  %v2409_v49 = vld [vmem:[%s4645_s3 + $0x318] sm:$0xf]  ;;  %v3009_v50 = vld [vmem:[%s4645_s3 + $0x330] sm:$0xf0]  ;;  %v2186_v53 = vor.u32 %v2953_v46, %v2185_v45  ;;  %v3128_v62 = vld [vmem:[%s4645_s3 + $0x6e8] sm:$0xf0] }
  0x40   :  { %v2157_v63 = vld [vmem:[%s4645_s3 + $0x120] sm:$0xf]  ;;  %v3002_v2 = vld [vmem:[%s4645_s3 + $0x2f8] sm:$0xf0]  ;;  %v2886_v6 = vor.u32 %v3128_v62, %v2885_v56  ;;  %v2633_v8 = vld [vmem:[%s4645_s3 + $0x4d8] sm:$0xf] }
  0x41   :  { %1653 = vmatpush.bf16.msra.mxu2 %v2546_v59  ;;  %1666 = vmatpush.bf16.msra.mxu3 %v2770_v61  ;;  %v2410_v61 = vor.u32 %v3009_v50, %v2409_v49  ;;  %v2381_v1 = vld [vmem:[%s4645_s3 + $0x2e0] sm:$0xf]  ;;  %v3121_v14 = vld [vmem:[%s4645_s3 + $0x6b0] sm:$0xf0]  ;;  %v2939_v16 = vld [vmem:[%s4645_s3 + $0x100] sm:$0xf0] }
  0x42   :  { %v2382_v12 = vor.u32 %v3002_v2, %v2381_v1  ;;  %v2353_v17 = vld [vmem:[%s4645_s3 + $0x2a8] sm:$0xf]  ;;  %v2605_v23 = vld [vmem:[%s4645_s3 + $0x4a0] sm:$0xf]  ;;  %v3058_v26 = vld [vmem:[%s4645_s3 + $0x4b8] sm:$0xf0] }
  0x43   :  { %1628 = vmatpush.bf16.msra.mxu0 %v2070_v54  ;;  %1641 = vmatpush.bf16.msra.mxu1 %v2294_v55  ;;  %v2661_v54 = vld [vmem:[%s4645_s3 + $0x510] sm:$0xf]  ;;  %v3072_v55 = vld [vmem:[%s4645_s3 + $0x528] sm:$0xf0]  ;;  %v3114_v28 = vld [vmem:[%s4645_s3 + $0x678] sm:$0xf0]  ;;  %v2606_v33 = vor.u32 %v3058_v26, %v2605_v23 }
  0x44   :  { %v2662_v5 = vor.u32 %v3072_v55, %v2661_v54  ;;  %v3051_v36 = vld [vmem:[%s4645_s3 + $0x480] sm:$0xf0]  ;;  %v2801_v37 = vld [vmem:[%s4645_s3 + $0x628] sm:$0xf]  ;;  %v2549_v49 = vld [vmem:[%s4645_s3 + $0x430] sm:$0xf] }
  0x45   :  { %1654 = vmatpush.bf16.msra.mxu2 %v2518_v7  ;;  %1667 = vmatpush.bf16.msra.mxu3 %v2742_v9  ;;  %v3065_v9 = vld [vmem:[%s4645_s3 + $0x4f0] sm:$0xf0]  ;;  %v3107_v38 = vld [vmem:[%s4645_s3 + $0x640] sm:$0xf0]  ;;  %v3044_v50 = vld [vmem:[%s4645_s3 + $0x448] sm:$0xf0] }
  0x46   :  { %v2802_v46 = vor.u32 %v3107_v38, %v2801_v37  ;;  %v2045_v55 = vld [vmem:[%s4645_s3 + $0x40] sm:$0xf]  ;;  %v2918_v56 = vld [vmem:[%s4645_s3 + $0x58] sm:$0xf0]  ;;  %v3037_v62 = vld [vmem:[%s4645_s3 + $0x410] sm:$0xf0] }
  0x47   :  { %1629 = vmatpush.bf16.msra.mxu0 %v2042_v0  ;;  %1642 = vmatpush.bf16.msra.mxu1 %v2266_v3  ;;  %v2946_v0 = vld [vmem:[%s4645_s3 + $0x138] sm:$0xf0]  ;;  %v2046_v1 = vor.u32 %v2918_v56, %v2045_v55  ;;  %v2936_v55 = vld [vmem:[%s4645_s3 + $0xec] sm:$0xf]  ;;  %v2131_v56 = vld [vmem:[%s4645_s3 + $0x104] sm:$0xf0] }
  0x48   :  { %v2158_v7 = vor.u32 %v2946_v0, %v2157_v63  ;;  %v2745_v63 = vld [vmem:[%s4645_s3 + $0x5b8] sm:$0xf]  ;;  %v3093_v0 = vld [vmem:[%s4645_s3 + $0x5d0] sm:$0xf0]  ;;  %v2950_v23 = vld [vmem:[%s4645_s3 + $0x15c] sm:$0xf] }
  0x49   :  { %1655 = vmatpush.bf16.msra.mxu2 %v2490_v18  ;;  %1668 = vmatpush.bf16.msra.mxu3 %v2714_v21  ;;  %v2995_v18 = vld [vmem:[%s4645_s3 + $0x2c0] sm:$0xf0]  ;;  %v2634_v21 = vor.u32 %v3065_v9, %v2633_v8  ;;  %v2215_v8 = vld [vmem:[%s4645_s3 + $0x1ac] sm:$0xf0]  ;;  %s1978_s26 = sshll.u32 %s4647_s5, 4  ;;  %vm1969_vm2 = vcmask 130048   ;;  %s1979_s26 = int_to_ptr.hbm [resolvable:$true] %s1978_s26 }
  0x4a   :  { %v2354_v25 = vor.u32 %v2995_v18, %v2353_v17  ;;  %v2717_v17 = vld [vmem:[%s4645_s3 + $0x580] sm:$0xf]  ;;  %v3086_v18 = vld [vmem:[%s4645_s3 + $0x598] sm:$0xf0] }
  0x4b   :  { %1630 = vmatpush.bf16.msra.mxu0 %v2014_v13  ;;  %1643 = vmatpush.bf16.msra.mxu1 %v2238_v15  ;;  %v2857_v13 = vld [vmem:[%s4645_s3 + $0x698] sm:$0xf]  ;;  %v2129_v15 = vld [vmem:[%s4645_s3 + $0xe8] sm:$0xf] }
  0x4c   :  { %v2858_v22 = vor.u32 %v3121_v14, %v2857_v13  ;;  %v3013_v13 = vld [vmem:[%s4645_s3 + $0x354] sm:$0xf]  ;;  %v2439_v14 = vld [vmem:[%s4645_s3 + $0x36c] sm:$0xf0] }
  0x4d   :  { %1656 = vmatpush.bf16.msra.mxu2 %v2462_v24  ;;  %1669 = vmatpush.bf16.msra.mxu3 %v2686_v27  ;;  %v2130_v24 = vor.u32 %v2939_v16, %v2129_v15  ;;  %v2829_v27 = vld [vmem:[%s4645_s3 + $0x660] sm:$0xf]  ;;  %v3030_v16 = vld [vmem:[%s4645_s3 + $0x3d8] sm:$0xf0] }
  0x4e   :  { %v2493_v15 = vld [vmem:[%s4645_s3 + $0x3c0] sm:$0xf] }
  0x4f   :  { %v2494_v26 = vor.u32 %v3030_v16, %v2493_v15 }
  0x8b   :  { %v96_v31 = vpop.f32.mrf.mxu0  ;;  %v109_v32 = vpop.f32.mrf.mxu1 }
  0x8c   :  { %v97_v34 = vadd.f32 %v96_v31, %v32_v29  ;;  %v110_v35 = vadd.f32 %v109_v32, %v33_v30  ;;  %v2101_v29 = vld [vmem:[%s4645_s3 + $0xb0] sm:$0xf]  ;;  %v2932_v30 = vld [vmem:[%s4645_s3 + $0xc8] sm:$0xf0] }
  0x8d   :  { %v2325_v31 = vld [vmem:[%s4645_s3 + $0x270] sm:$0xf]  ;;  %v2988_v32 = vld [vmem:[%s4645_s3 + $0x288] sm:$0xf0] }
  0x8e   :  { %v139_v39 = vmax.f32 %v97_v34, 0.0  ;;  %v140_v40 = vmax.f32 %v110_v35, 0.0  ;;  %v2830_v34 = vor.u32 %v3114_v28, %v2829_v27  ;;  %v2577_v35 = vld [vmem:[%s4645_s3 + $0x468] sm:$0xf]  ;;  %v2718_v27 = vor.u32 %v3086_v18, %v2717_v17  ;;  %v2411_v28 = vld [vmem:[%s4645_s3 + $0x334] sm:$0xf0] }
  0x8f   :  { %v2578_v45 = vor.u32 %v3051_v36, %v2577_v35  ;;  %v3125_v35 = vld [vmem:[%s4645_s3 + $0x6d4] sm:$0xf]  ;;  %v2887_v36 = vld [vmem:[%s4645_s3 + $0x6ec] sm:$0xf0]  ;;  %v2922_v17 = vld [vmem:[%s4645_s3 + $0x7c] sm:$0xf] }
  0x90   :  { %v3649_v47 = vpack.c.bf16 %v139_v39, %v139_v39  ;;  %v3651_v48 = vpack.c.bf16 %v140_v40, %v140_v40  ;;  %v2102_v39 = vor.u32 %v2932_v30, %v2101_v29  ;;  %v2326_v40 = vor.u32 %v2988_v32, %v2325_v31  ;;  %v2465_v29 = vld [vmem:[%s4645_s3 + $0x388] sm:$0xf]  ;;  %v3023_v30 = vld [vmem:[%s4645_s3 + $0x3a0] sm:$0xf0]  ;;  %v2075_v18 = vld [vmem:[%s4645_s3 + $0x94] sm:$0xf0] }
  0x91   :  { %v2689_v31 = vld [vmem:[%s4645_s3 + $0x548] sm:$0xf]  ;;  %v3079_v32 = vld [vmem:[%s4645_s3 + $0x560] sm:$0xf0] }
  0x92   :  { %1579 = vmatmul.bf16.vlgmr.msrb.gmra.mxu0 %v3649_v47  ;;  %1592 = vmatmul.bf16.vlgmr.msrb.gmra.mxu1 %v3651_v48 }
  0x93   :  { %v122_v51 = vpop.f32.mrf.mxu2  ;;  %v135_v52 = vpop.f32.mrf.mxu3  ;;  %1675 = vmatpush.bf16.msrb.mxu0 %v2214_v43  ;;  %1688 = vmatpush.bf16.msrb.mxu1 %v2438_v44  ;;  %v2297_v43 = vld [vmem:[%s4645_s3 + $0x238] sm:$0xf]  ;;  %v2981_v44 = vld [vmem:[%s4645_s3 + $0x250] sm:$0xf0] }
  0x94   :  { %v123_v57 = vadd.f32 %v122_v51, %v34_v41  ;;  %v136_v58 = vadd.f32 %v135_v52, %v35_v42  ;;  %v98_v59 = vpop.f32.mrf.mxu0  ;;  %v111_v60 = vpop.f32.mrf.mxu1  ;;  %v2073_v41 = vld [vmem:[%s4645_s3 + $0x78] sm:$0xf]  ;;  %v2925_v42 = vld [vmem:[%s4645_s3 + $0x90] sm:$0xf0]  ;;  %v2773_v51 = vld [vmem:[%s4645_s3 + $0x5f0] sm:$0xf]  ;;  %v2298_v54 = vor.u32 %v2981_v44, %v2297_v43 }
  0x95   :  { %v3100_v52 = vld [vmem:[%s4645_s3 + $0x608] sm:$0xf0]  ;;  %v2550_v59 = vor.u32 %v3044_v50, %v2549_v49  ;;  %v2999_v43 = vld [vmem:[%s4645_s3 + $0x2e4] sm:$0xf]  ;;  %v2383_v44 = vld [vmem:[%s4645_s3 + $0x2fc] sm:$0xf0] }
  0x96   :  { %v141_v3 = vmax.f32 %v123_v57, 0.0  ;;  %v142_v4 = vmax.f32 %v136_v58, 0.0  ;;  %v2269_v57 = vld [vmem:[%s4645_s3 + $0x200] sm:$0xf]  ;;  %v2974_v58 = vld [vmem:[%s4645_s3 + $0x218] sm:$0xf0]  ;;  %v2774_v60 = vor.u32 %v3100_v52, %v2773_v51 }
  0x97   :  { %1676 = vmatpush.bf16.msrb.mxu0 %v2186_v53  ;;  %1689 = vmatpush.bf16.msrb.mxu1 %v2410_v61  ;;  %v2074_v53 = vor.u32 %v2925_v42, %v2073_v41  ;;  %v2521_v61 = vld [vmem:[%s4645_s3 + $0x3f8] sm:$0xf]  ;;  %v2270_v2 = vor.u32 %v2974_v58, %v2269_v57  ;;  %v2690_v41 = vor.u32 %v3079_v32, %v2689_v31  ;;  %v2159_v42 = vld [vmem:[%s4645_s3 + $0x13c] sm:$0xf0]  ;;  %v3062_v49 = vld [vmem:[%s4645_s3 + $0x4dc] sm:$0xf] }
  0x98   :  { %v3691_v10 = vpack.c.bf16 %v141_v3, %v141_v3  ;;  %v3693_v11 = vpack.c.bf16 %v142_v4, %v142_v4  ;;  %v2017_v3 = vld [vmem:[%s4645_s3 + $0x8] sm:$0xf]  ;;  %v2911_v4 = vld [vmem:[%s4645_s3 + $0x20] sm:$0xf0]  ;;  %v2522_v9 = vor.u32 %v3037_v62, %v2521_v61  ;;  %v2635_v50 = vld [vmem:[%s4645_s3 + $0x4f4] sm:$0xf0] }
  0x99   :  { %v3118_v51 = vld [vmem:[%s4645_s3 + $0x69c] sm:$0xf]  ;;  %v2859_v52 = vld [vmem:[%s4645_s3 + $0x6b4] sm:$0xf0]  ;;  %v2992_v57 = vld [vmem:[%s4645_s3 + $0x2ac] sm:$0xf] }
  0x9a   :  { %1605 = vmatmul.bf16.vlgmr.msrb.gmra.mxu2 %v3691_v10  ;;  %1618 = vmatmul.bf16.vlgmr.msrb.gmra.mxu3 %v3693_v11  ;;  %v2355_v58 = vld [vmem:[%s4645_s3 + $0x2c4] sm:$0xf0]  ;;  %v3055_v61 = vld [vmem:[%s4645_s3 + $0x4a4] sm:$0xf]  ;;  %v2607_v62 = vld [vmem:[%s4645_s3 + $0x4bc] sm:$0xf0] }
  0x9b   :  { %1701 = vmatpush.bf16.msrb.mxu2 %v2662_v5  ;;  %1714 = vmatpush.bf16.msrb.mxu3 %v2886_v6  ;;  %v124_v19 = vpop.f32.mrf.mxu2  ;;  %v137_v20 = vpop.f32.mrf.mxu3  ;;  %v2241_v5 = vld [vmem:[%s4645_s3 + $0x1c8] sm:$0xf]  ;;  %v2967_v6 = vld [vmem:[%s4645_s3 + $0x1e0] sm:$0xf0]  ;;  %v2271_v32 = vld [vmem:[%s4645_s3 + $0x21c] sm:$0xf0] }
  0x9c   :  { %1677 = vmatpush.bf16.msrb.mxu0 %v2158_v7  ;;  %1690 = vmatpush.bf16.msrb.mxu1 %v2382_v12  ;;  %v2957_v7 = vld [vmem:[%s4645_s3 + $0x194] sm:$0xf]  ;;  %v2746_v12 = vor.u32 %v3093_v0, %v2745_v63  ;;  %v2018_v19 = vor.u32 %v2911_v4, %v2017_v3  ;;  %v2242_v20 = vor.u32 %v2967_v6, %v2241_v5  ;;  %v3111_v63 = vld [vmem:[%s4645_s3 + $0x664] sm:$0xf]  ;;  %v2831_v0 = vld [vmem:[%s4645_s3 + $0x67c] sm:$0xf0] }
  0x9d   :  { %v2929_v3 = vld [vmem:[%s4645_s3 + $0xb4] sm:$0xf]  ;;  %v2103_v4 = vld [vmem:[%s4645_s3 + $0xcc] sm:$0xf0]  ;;  %v2971_v31 = vld [vmem:[%s4645_s3 + $0x204] sm:$0xf] }
  0x9e   :  { %v2985_v5 = vld [vmem:[%s4645_s3 + $0x274] sm:$0xf]  ;;  %v2327_v6 = vld [vmem:[%s4645_s3 + $0x28c] sm:$0xf0]  ;;  %v2106_v15 = vor.u32 %v2929_v3, %v2103_v4  ;;  %v3020_v3 = vld [vmem:[%s4645_s3 + $0x38c] sm:$0xf] }
  0x9f   :  { %1702 = vmatpush.bf16.msrb.mxu2 %v2634_v21  ;;  %1715 = vmatpush.bf16.msrb.mxu3 %v2858_v22  ;;  %v2218_v21 = vor.u32 %v2957_v7, %v2215_v8  ;;  %v2442_v22 = vor.u32 %v3013_v13, %v2439_v14  ;;  %v2610_v7 = vor.u32 %v3055_v61, %v2607_v62  ;;  %v3104_v13 = vld [vmem:[%s4645_s3 + $0x62c] sm:$0xf]  ;;  %v2803_v14 = vld [vmem:[%s4645_s3 + $0x644] sm:$0xf0]  ;;  %v2193_v61 = vld [vmem:[%s4645_s3 + $0x160] sm:$0xf] }
  0xa0   :  { %1678 = vmatpush.bf16.msrb.mxu0 %v2130_v24  ;;  %1691 = vmatpush.bf16.msrb.mxu1 %v2354_v25  ;;  %v2187_v24 = vld [vmem:[%s4645_s3 + $0x174] sm:$0xf0]  ;;  %v3006_v25 = vld [vmem:[%s4645_s3 + $0x31c] sm:$0xf]  ;;  %v2834_v8 = vor.u32 %v3111_v63, %v2831_v0  ;;  %v2330_v16 = vor.u32 %v2985_v5, %v2327_v6  ;;  %v2417_v63 = vld [vmem:[%s4645_s3 + $0x320] sm:$0xf] }
  0xa1   :  { %v2190_v37 = vor.u32 %v2950_v23, %v2187_v24  ;;  %v2414_v38 = vor.u32 %v3006_v25, %v2411_v28  ;;  %v3041_v23 = vld [vmem:[%s4645_s3 + $0x434] sm:$0xf]  ;;  %v2551_v24 = vld [vmem:[%s4645_s3 + $0x44c] sm:$0xf0]  ;;  %v2954_v62 = vld [vmem:[%s4645_s3 + $0x178] sm:$0xf0] }
  0xa2   :  { %1631 = vmatmul.bf16.vlgmr.msra.gmra.mxu0 %v3649_v47  ;;  %1644 = vmatmul.bf16.vlgmr.msra.gmra.mxu1 %v3651_v48  ;;  %v3097_v25 = vld [vmem:[%s4645_s3 + $0x5f4] sm:$0xf]  ;;  %v2467_v4 = vld [vmem:[%s4645_s3 + $0x3a4] sm:$0xf0]  ;;  %v3076_v5 = vld [vmem:[%s4645_s3 + $0x54c] sm:$0xf] }
  0xa3   :  { %1703 = vmatpush.bf16.msrb.mxu2 %v2606_v33  ;;  %1716 = vmatpush.bf16.msrb.mxu3 %v2830_v34  ;;  %v3069_v33 = vld [vmem:[%s4645_s3 + $0x514] sm:$0xf]  ;;  %v2663_v34 = vld [vmem:[%s4645_s3 + $0x52c] sm:$0xf0]  ;;  %v2691_v6 = vld [vmem:[%s4645_s3 + $0x564] sm:$0xf0] }
  0xa4   :  { %1679 = vmatpush.bf16.msrb.mxu0 %v2102_v39  ;;  %1692 = vmatpush.bf16.msrb.mxu1 %v2326_v40  ;;  %v2943_v39 = vld [vmem:[%s4645_s3 + $0x124] sm:$0xf]  ;;  %v2466_v40 = vor.u32 %v3023_v30, %v2465_v29  ;;  %v2047_v30 = vld [vmem:[%s4645_s3 + $0x5c] sm:$0xf0] }
  0xa5   :  { %v2915_v29 = vld [vmem:[%s4645_s3 + $0x44] sm:$0xf] }
  0xa7   :  { %1704 = vmatpush.bf16.msrb.mxu2 %v2578_v45  ;;  %1717 = vmatpush.bf16.msrb.mxu3 %v2802_v46  ;;  %v2666_v45 = vor.u32 %v3069_v33, %v2663_v34  ;;  %v2890_v46 = vor.u32 %v3125_v35, %v2887_v36  ;;  %v2554_v33 = vor.u32 %v3041_v23, %v2551_v24  ;;  %v3034_v35 = vld [vmem:[%s4645_s3 + $0x3fc] sm:$0xf]  ;;  %v2523_v36 = vld [vmem:[%s4645_s3 + $0x414] sm:$0xf0]  ;;  %v2641_v23 = vld [vmem:[%s4645_s3 + $0x4e0] sm:$0xf] }
  0xa8   :  { %1680 = vmatpush.bf16.msrb.mxu0 %v2074_v53  ;;  %1693 = vmatpush.bf16.msrb.mxu1 %v2298_v54  ;;  %v2162_v53 = vor.u32 %v2943_v39, %v2159_v42  ;;  %v2386_v54 = vor.u32 %v2999_v43, %v2383_v44  ;;  %v2050_v39 = vor.u32 %v2915_v29, %v2047_v30  ;;  %v2019_v42 = vld [vmem:[%s4645_s3 + $0x24] sm:$0xf0]  ;;  %v2964_v43 = vld [vmem:[%s4645_s3 + $0x1cc] sm:$0xf]  ;;  %v3066_v24 = vld [vmem:[%s4645_s3 + $0x4f8] sm:$0xf0] }
  0xa9   :  { %v2243_v44 = vld [vmem:[%s4645_s3 + $0x1e4] sm:$0xf0]  ;;  %v2137_v29 = vld [vmem:[%s4645_s3 + $0xf0] sm:$0xf]  ;;  %v2940_v30 = vld [vmem:[%s4645_s3 + $0x108] sm:$0xf0] }
  0xaa   :  { %1657 = vmatmul.bf16.vlgmr.msra.gmra.mxu2 %v3691_v10  ;;  %1670 = vmatmul.bf16.vlgmr.msra.gmra.mxu3 %v3693_v11 }
  0xab   :  { %1705 = vmatpush.bf16.msrb.mxu2 %v2550_v59  ;;  %1718 = vmatpush.bf16.msrb.mxu3 %v2774_v60  ;;  %v2638_v59 = vor.u32 %v3062_v49, %v2635_v50  ;;  %v2862_v60 = vor.u32 %v3118_v51, %v2859_v52  ;;  %v2526_v49 = vor.u32 %v3034_v35, %v2523_v36  ;;  %v2445_v51 = vld [vmem:[%s4645_s3 + $0x358] sm:$0xf]  ;;  %v3017_v52 = vld [vmem:[%s4645_s3 + $0x370] sm:$0xf0]  ;;  %v2613_v35 = vld [vmem:[%s4645_s3 + $0x4a8] sm:$0xf] }
  0xac   :  { %1681 = vmatpush.bf16.msrb.mxu0 %v2046_v1  ;;  %1694 = vmatpush.bf16.msrb.mxu1 %v2270_v2  ;;  %v2134_v1 = vor.u32 %v2936_v55, %v2131_v56  ;;  %v2358_v2 = vor.u32 %v2992_v57, %v2355_v58  ;;  %v3083_v55 = vld [vmem:[%s4645_s3 + $0x584] sm:$0xf]  ;;  %v2719_v56 = vld [vmem:[%s4645_s3 + $0x59c] sm:$0xf0]  ;;  %v2246_v58 = vor.u32 %v2964_v43, %v2243_v44 }
  0xad   :  { %v3059_v36 = vld [vmem:[%s4645_s3 + $0x4c0] sm:$0xf0] }
  0xae   :  { %v2614_v43 = vor.u32 %v3059_v36, %v2613_v35  ;;  %v2951_v35 = vld [vmem:[%s4645_s3 + $0x164] sm:$0xf]  ;;  %v2195_v36 = vld [vmem:[%s4645_s3 + $0x17c] sm:$0xf0] }
  0xaf   :  { %1706 = vmatpush.bf16.msrb.mxu2 %v2522_v9  ;;  %1719 = vmatpush.bf16.msrb.mxu3 %v2746_v12  ;;  %v3048_v9 = vld [vmem:[%s4645_s3 + $0x46c] sm:$0xf]  ;;  %v2579_v12 = vld [vmem:[%s4645_s3 + $0x484] sm:$0xf0] }
  0xb0   :  { %1682 = vmatpush.bf16.msrb.mxu0 %v2018_v19  ;;  %1695 = vmatpush.bf16.msrb.mxu1 %v2242_v20  ;;  %v2978_v19 = vld [vmem:[%s4645_s3 + $0x23c] sm:$0xf]  ;;  %v2299_v20 = vld [vmem:[%s4645_s3 + $0x254] sm:$0xf0] }
  0xb1   :  { %v2302_v28 = vor.u32 %v2978_v19, %v2299_v20 }
  0xb3   :  { %1707 = vmatpush.bf16.msrb.mxu2 %v2494_v26  ;;  %1720 = vmatpush.bf16.msrb.mxu3 %v2718_v27  ;;  %v2775_v26 = vld [vmem:[%s4645_s3 + $0x60c] sm:$0xf0]  ;;  %v2078_v27 = vor.u32 %v2922_v17, %v2075_v18  ;;  %v2165_v17 = vld [vmem:[%s4645_s3 + $0x128] sm:$0xf]  ;;  %v2947_v18 = vld [vmem:[%s4645_s3 + $0x140] sm:$0xf0] }
  0xb4   :  { %1727 = vmatpush.bf16.msra.mxu0 %v2218_v21  ;;  %1740 = vmatpush.bf16.msra.mxu1 %v2442_v22  ;;  %v2582_v21 = vor.u32 %v3048_v9, %v2579_v12  ;;  %v2806_v22 = vor.u32 %v3104_v13, %v2803_v14  ;;  %v2778_v34 = vor.u32 %v3097_v25, %v2775_v26  ;;  %v2893_v9 = vld [vmem:[%s4645_s3 + $0x6d8] sm:$0xf]  ;;  %v3129_v12 = vld [vmem:[%s4645_s3 + $0x6f0] sm:$0xf0]  ;;  %v2865_v25 = vld [vmem:[%s4645_s3 + $0x6a0] sm:$0xf] }
  0xb5   :  { %1683 = vmatmul.bf16.vlgmr.msrb.gmra.mxu0 %v3649_v47  ;;  %1696 = vmatmul.bf16.vlgmr.msrb.gmra.mxu1 %v3651_v48  ;;  %v2194_v13 = vor.u32 %v2954_v62, %v2193_v61  ;;  %v2894_v20 = vor.u32 %v3129_v12, %v2893_v9  ;;  %v3122_v26 = vld [vmem:[%s4645_s3 + $0x6b8] sm:$0xf0]  ;;  %v2557_v61 = vld [vmem:[%s4645_s3 + $0x438] sm:$0xf]  ;;  %v3045_v62 = vld [vmem:[%s4645_s3 + $0x450] sm:$0xf0] }
  0xb6   :  { %v2529_v9 = vld [vmem:[%s4645_s3 + $0x400] sm:$0xf]  ;;  %v3038_v12 = vld [vmem:[%s4645_s3 + $0x418] sm:$0xf0] }
  0xb7   :  { %1708 = vmatpush.bf16.msrb.mxu2 %v2466_v40  ;;  %1721 = vmatpush.bf16.msrb.mxu3 %v2690_v41  ;;  %v2274_v40 = vor.u32 %v2971_v31, %v2271_v32  ;;  %v2908_v41 = vld [vmem:[%s4645_s3 + $0xc] sm:$0xf]  ;;  %v2642_v31 = vor.u32 %v3066_v24, %v2641_v23  ;;  %v2866_v32 = vor.u32 %v3122_v26, %v2865_v25  ;;  %v2958_v23 = vld [vmem:[%s4645_s3 + $0x19c] sm:$0xf]  ;;  %v2223_v24 = vld [vmem:[%s4645_s3 + $0x1b4] sm:$0xf0] }
  0xb8   :  { %1728 = vmatpush.bf16.msra.mxu0 %v2190_v37  ;;  %1741 = vmatpush.bf16.msra.mxu1 %v2414_v38  ;;  %v3090_v37 = vld [vmem:[%s4645_s3 + $0x5bc] sm:$0xf]  ;;  %v2747_v38 = vld [vmem:[%s4645_s3 + $0x5d4] sm:$0xf0]  ;;  %v2022_v57 = vor.u32 %v2908_v41, %v2019_v42  ;;  %v2933_v42 = vld [vmem:[%s4645_s3 + $0xd0] sm:$0xf0] }
  0xb9   :  { %v2750_v50 = vor.u32 %v3090_v37, %v2747_v38  ;;  %v2837_v37 = vld [vmem:[%s4645_s3 + $0x668] sm:$0xf]  ;;  %v3115_v38 = vld [vmem:[%s4645_s3 + $0x680] sm:$0xf0]  ;;  %v2109_v41 = vld [vmem:[%s4645_s3 + $0xb8] sm:$0xf] }
  0xba   :  { %1709 = vmatmul.bf16.vlgmr.msrb.gmra.mxu2 %v3691_v10  ;;  %1722 = vmatmul.bf16.vlgmr.msrb.gmra.mxu3 %v3693_v11  ;;  %v2838_v44 = vor.u32 %v3115_v38, %v2837_v37  ;;  %v3014_v25 = vld [vmem:[%s4645_s3 + $0x35c] sm:$0xf]  ;;  %v2447_v26 = vld [vmem:[%s4645_s3 + $0x374] sm:$0xf0]  ;;  %v3007_v37 = vld [vmem:[%s4645_s3 + $0x324] sm:$0xf] }
  0xbb   :  { %1753 = vmatpush.bf16.msra.mxu2 %v2666_v45  ;;  %1766 = vmatpush.bf16.msra.mxu3 %v2890_v46  ;;  %v2221_v45 = vld [vmem:[%s4645_s3 + $0x198] sm:$0xf]  ;;  %v2961_v46 = vld [vmem:[%s4645_s3 + $0x1b0] sm:$0xf0] }
  0xbc   :  { %1729 = vmatpush.bf16.msra.mxu0 %v2162_v53  ;;  %1742 = vmatpush.bf16.msra.mxu1 %v2386_v54  ;;  %v3027_v53 = vld [vmem:[%s4645_s3 + $0x3c4] sm:$0xf]  ;;  %v2495_v54 = vld [vmem:[%s4645_s3 + $0x3dc] sm:$0xf0] }
  0xbd   :  { %v2498_v0 = vor.u32 %v3027_v53, %v2495_v54  ;;  %v2110_v53 = vor.u32 %v2933_v42, %v2109_v41  ;;  %v2473_v41 = vld [vmem:[%s4645_s3 + $0x390] sm:$0xf]  ;;  %v3024_v42 = vld [vmem:[%s4645_s3 + $0x3a8] sm:$0xf0] }
  0xbf   :  { %1754 = vmatpush.bf16.msra.mxu2 %v2638_v59  ;;  %1767 = vmatpush.bf16.msra.mxu3 %v2862_v60  ;;  %v2222_v59 = vor.u32 %v2961_v46, %v2221_v45  ;;  %v2446_v60 = vor.u32 %v3017_v52, %v2445_v51  ;;  %v2333_v45 = vld [vmem:[%s4645_s3 + $0x278] sm:$0xf]  ;;  %v2989_v46 = vld [vmem:[%s4645_s3 + $0x290] sm:$0xf0]  ;;  %v2809_v51 = vld [vmem:[%s4645_s3 + $0x630] sm:$0xf] }
  0xc0   :  { %1730 = vmatpush.bf16.msra.mxu0 %v2134_v1  ;;  %1743 = vmatpush.bf16.msra.mxu1 %v2358_v2  ;;  %v2722_v1 = vor.u32 %v3083_v55, %v2719_v56  ;;  %v3010_v2 = vld [vmem:[%s4645_s3 + $0x338] sm:$0xf0]  ;;  %v3108_v52 = vld [vmem:[%s4645_s3 + $0x648] sm:$0xf0]  ;;  %v2334_v54 = vor.u32 %v2989_v46, %v2333_v45  ;;  %v2081_v55 = vld [vmem:[%s4645_s3 + $0x80] sm:$0xf] }
  0xc1   :  { %v2418_v14 = vor.u32 %v3010_v2, %v2417_v63  ;;  %v2926_v56 = vld [vmem:[%s4645_s3 + $0x98] sm:$0xf0]  ;;  %v2781_v63 = vld [vmem:[%s4645_s3 + $0x5f8] sm:$0xf] }
  0xc2   :  { %v3070_v45 = vld [vmem:[%s4645_s3 + $0x51c] sm:$0xf]  ;;  %v2671_v46 = vld [vmem:[%s4645_s3 + $0x534] sm:$0xf0] }
  0xc3   :  { %1755 = vmatpush.bf16.msra.mxu2 %v2610_v7  ;;  %1768 = vmatpush.bf16.msra.mxu3 %v2834_v8  ;;  %v2669_v7 = vld [vmem:[%s4645_s3 + $0x518] sm:$0xf]  ;;  %v3073_v8 = vld [vmem:[%s4645_s3 + $0x530] sm:$0xf0] }
  0xc4   :  { %1731 = vmatpush.bf16.msra.mxu0 %v2106_v15  ;;  %1744 = vmatpush.bf16.msra.mxu1 %v2330_v16  ;;  %v2470_v15 = vor.u32 %v3020_v3, %v2467_v4  ;;  %v2694_v16 = vor.u32 %v3076_v5, %v2691_v6  ;;  %v2670_v19 = vor.u32 %v3073_v8, %v2669_v7  ;;  %v2053_v3 = vld [vmem:[%s4645_s3 + $0x48] sm:$0xf]  ;;  %v2919_v4 = vld [vmem:[%s4645_s3 + $0x60] sm:$0xf0] }
  0xc5   :  { %v2558_v5 = vor.u32 %v3045_v62, %v2557_v61  ;;  %v2277_v7 = vld [vmem:[%s4645_s3 + $0x208] sm:$0xf]  ;;  %v2975_v8 = vld [vmem:[%s4645_s3 + $0x220] sm:$0xf0]  ;;  %v2643_v62 = vld [vmem:[%s4645_s3 + $0x4fc] sm:$0xf0] }
  0xc6   :  { %v3063_v61 = vld [vmem:[%s4645_s3 + $0x4e4] sm:$0xf] }
  0xc7   :  { %1756 = vmatpush.bf16.msra.mxu2 %v2582_v21  ;;  %1769 = vmatpush.bf16.msra.mxu3 %v2806_v22  ;;  %v2389_v21 = vld [vmem:[%s4645_s3 + $0x2e8] sm:$0xf]  ;;  %v3003_v22 = vld [vmem:[%s4645_s3 + $0x300] sm:$0xf0] }
  0xc8   :  { %1732 = vmatpush.bf16.msra.mxu0 %v2078_v27  ;;  %1745 = vmatpush.bf16.msra.mxu1 %v2302_v28  ;;  %v2166_v27 = vor.u32 %v2947_v18, %v2165_v17  ;;  %v2390_v28 = vor.u32 %v3003_v22, %v2389_v21  ;;  %v2025_v17 = vld [vmem:[%s4645_s3 + $0x10] sm:$0xf]  ;;  %v2912_v18 = vld [vmem:[%s4645_s3 + $0x28] sm:$0xf0] }
  0xc9   :  { %v2968_v22 = vld [vmem:[%s4645_s3 + $0x1e8] sm:$0xf0] }
  0xcb   :  { %1757 = vmatpush.bf16.msra.mxu2 %v2554_v33  ;;  %1770 = vmatpush.bf16.msra.mxu3 %v2778_v34  ;;  %v2361_v33 = vld [vmem:[%s4645_s3 + $0x2b0] sm:$0xf]  ;;  %v2996_v34 = vld [vmem:[%s4645_s3 + $0x2c8] sm:$0xf0] }
  0xcc   :  { %1733 = vmatpush.bf16.msra.mxu0 %v2050_v39  ;;  %1746 = vmatpush.bf16.msra.mxu1 %v2274_v40  ;;  %v2138_v39 = vor.u32 %v2940_v30, %v2137_v29  ;;  %v2362_v40 = vor.u32 %v2996_v34, %v2361_v33  ;;  %v2725_v29 = vld [vmem:[%s4645_s3 + $0x588] sm:$0xf]  ;;  %v3087_v30 = vld [vmem:[%s4645_s3 + $0x5a0] sm:$0xf0]  ;;  %v2226_v33 = vor.u32 %v2958_v23, %v2223_v24  ;;  %v3049_v23 = vld [vmem:[%s4645_s3 + $0x474] sm:$0xf] }
  0xcd   :  { %v2450_v34 = vor.u32 %v3014_v25, %v2447_v26  ;;  %v2587_v24 = vld [vmem:[%s4645_s3 + $0x48c] sm:$0xf0]  ;;  %v3105_v25 = vld [vmem:[%s4645_s3 + $0x634] sm:$0xf] }
  0xce   :  { %v2811_v26 = vld [vmem:[%s4645_s3 + $0x64c] sm:$0xf0] }
  0xcf   :  { %1758 = vmatpush.bf16.msra.mxu2 %v2526_v49  ;;  %1771 = vmatpush.bf16.msra.mxu3 %v2750_v50  ;;  %v2585_v49 = vld [vmem:[%s4645_s3 + $0x470] sm:$0xf]  ;;  %v3052_v50 = vld [vmem:[%s4645_s3 + $0x488] sm:$0xf0] }
  0xd0   :  { %1734 = vmatpush.bf16.msra.mxu0 %v2022_v57  ;;  %1747 = vmatpush.bf16.msra.mxu1 %v2246_v58  ;;  %v2586_v57 = vor.u32 %v3052_v50, %v2585_v49  ;;  %v2810_v58 = vor.u32 %v3108_v52, %v2809_v51  ;;  %v3126_v49 = vld [vmem:[%s4645_s3 + $0x6dc] sm:$0xf]  ;;  %v2895_v50 = vld [vmem:[%s4645_s3 + $0x6f4] sm:$0xf0]  ;;  %v2198_v51 = vor.u32 %v2951_v35, %v2195_v36 }
  0xd1   :  { %v3042_v35 = vld [vmem:[%s4645_s3 + $0x43c] sm:$0xf]  ;;  %v2559_v36 = vld [vmem:[%s4645_s3 + $0x454] sm:$0xf0] }
  0xd3   :  { %1759 = vmatpush.bf16.msra.mxu2 %v2498_v0  ;;  %1772 = vmatpush.bf16.msra.mxu3 %v2722_v1  ;;  %v3101_v0 = vld [vmem:[%s4645_s3 + $0x610] sm:$0xf0]  ;;  %v2082_v1 = vor.u32 %v2926_v56, %v2081_v55  ;;  %v2944_v55 = vld [vmem:[%s4645_s3 + $0x12c] sm:$0xf]  ;;  %v2167_v56 = vld [vmem:[%s4645_s3 + $0x144] sm:$0xf0] }
  0xd4   :  { %1779 = vmatpush.bf16.msrb.mxu0 %v2222_v59  ;;  %1792 = vmatpush.bf16.msrb.mxu1 %v2446_v60  ;;  %v2305_v59 = vld [vmem:[%s4645_s3 + $0x240] sm:$0xf]  ;;  %v2982_v60 = vld [vmem:[%s4645_s3 + $0x258] sm:$0xf0]  ;;  %v2782_v6 = vor.u32 %v3101_v0, %v2781_v63  ;;  %v3119_v63 = vld [vmem:[%s4645_s3 + $0x6a4] sm:$0xf] }
  0xd5   :  { %1735 = vmatmul.bf16.vlgmr.msra.gmra.mxu0 %v3649_v47  ;;  %1748 = vmatmul.bf16.vlgmr.msra.gmra.mxu1 %v3651_v48  ;;  %v2306_v2 = vor.u32 %v2982_v60, %v2305_v59  ;;  %v3000_v59 = vld [vmem:[%s4645_s3 + $0x2ec] sm:$0xf]  ;;  %v2391_v60 = vld [vmem:[%s4645_s3 + $0x304] sm:$0xf0]  ;;  %v2867_v0 = vld [vmem:[%s4645_s3 + $0x6bc] sm:$0xf0] }
  0xd7   :  { %1760 = vmatpush.bf16.msra.mxu2 %v2470_v15  ;;  %1773 = vmatpush.bf16.msra.mxu3 %v2694_v16  ;;  %v2054_v15 = vor.u32 %v2919_v4, %v2053_v3  ;;  %v2278_v16 = vor.u32 %v2975_v8, %v2277_v7  ;;  %v2937_v3 = vld [vmem:[%s4645_s3 + $0xf4] sm:$0xf]  ;;  %v2139_v4 = vld [vmem:[%s4645_s3 + $0x10c] sm:$0xf0] }
  0xd8   :  { %1780 = vmatpush.bf16.msrb.mxu0 %v2194_v13  ;;  %1793 = vmatpush.bf16.msrb.mxu1 %v2418_v14  ;;  %v2753_v13 = vld [vmem:[%s4645_s3 + $0x5c0] sm:$0xf]  ;;  %v3094_v14 = vld [vmem:[%s4645_s3 + $0x5d8] sm:$0xf0]  ;;  %v2993_v7 = vld [vmem:[%s4645_s3 + $0x2b4] sm:$0xf] }
  0xd9   :  { %v2754_v21 = vor.u32 %v3094_v14, %v2753_v13  ;;  %v2363_v8 = vld [vmem:[%s4645_s3 + $0x2cc] sm:$0xf0]  ;;  %v3112_v13 = vld [vmem:[%s4645_s3 + $0x66c] sm:$0xf]  ;;  %v2839_v14 = vld [vmem:[%s4645_s3 + $0x684] sm:$0xf0] }
  0xda   :  { %1761 = vmatmul.bf16.vlgmr.msra.gmra.mxu2 %v3691_v10  ;;  %1774 = vmatmul.bf16.vlgmr.msra.gmra.mxu3 %v3693_v11 }
  0xdb   :  { %1805 = vmatpush.bf16.msrb.mxu2 %v2670_v19  ;;  %1818 = vmatpush.bf16.msrb.mxu3 %v2894_v20  ;;  %v2249_v19 = vld [vmem:[%s4645_s3 + $0x1d0] sm:$0xf]  ;;  %v2530_v20 = vor.u32 %v3038_v12, %v2529_v9  ;;  %v3056_v9 = vld [vmem:[%s4645_s3 + $0x4ac] sm:$0xf]  ;;  %v2615_v12 = vld [vmem:[%s4645_s3 + $0x4c4] sm:$0xf0] }
  0xdc   :  { %1781 = vmatpush.bf16.msrb.mxu0 %v2166_v27  ;;  %1794 = vmatpush.bf16.msrb.mxu1 %v2390_v28  ;;  %v2501_v27 = vld [vmem:[%s4645_s3 + $0x3c8] sm:$0xf]  ;;  %v3031_v28 = vld [vmem:[%s4645_s3 + $0x3e0] sm:$0xf0] }
  0xdd   :  { %v2502_v38 = vor.u32 %v3031_v28, %v2501_v27 }
  0xdf   :  { %1806 = vmatpush.bf16.msrb.mxu2 %v2642_v31  ;;  %1819 = vmatpush.bf16.msrb.mxu3 %v2866_v32  ;;  %v2026_v31 = vor.u32 %v2912_v18, %v2025_v17  ;;  %v2250_v32 = vor.u32 %v2968_v22, %v2249_v19  ;;  %v2930_v17 = vld [vmem:[%s4645_s3 + $0xbc] sm:$0xf]  ;;  %v2111_v18 = vld [vmem:[%s4645_s3 + $0xd4] sm:$0xf0]  ;;  %v2618_v19 = vor.u32 %v3056_v9, %v2615_v12  ;;  %v2201_v9 = vld [vmem:[%s4645_s3 + $0x168] sm:$0xf] }
  0xe0   :  { %1782 = vmatpush.bf16.msrb.mxu0 %v2138_v39  ;;  %1795 = vmatpush.bf16.msrb.mxu1 %v2362_v40  ;;  %v2726_v39 = vor.u32 %v3087_v30, %v2725_v29  ;;  %v2419_v40 = vld [vmem:[%s4645_s3 + $0x33c] sm:$0xf0]  ;;  %v2335_v22 = vld [vmem:[%s4645_s3 + $0x294] sm:$0xf0]  ;;  %v2114_v27 = vor.u32 %v2930_v17, %v2111_v18  ;;  %v2923_v29 = vld [vmem:[%s4645_s3 + $0x84] sm:$0xf] }
  0xe1   :  { %v2422_v52 = vor.u32 %v3007_v37, %v2419_v40  ;;  %v2083_v30 = vld [vmem:[%s4645_s3 + $0x9c] sm:$0xf0]  ;;  %v3098_v37 = vld [vmem:[%s4645_s3 + $0x5fc] sm:$0xf]  ;;  %v2955_v12 = vld [vmem:[%s4645_s3 + $0x180] sm:$0xf0] }
  0xe2   :  { %v3021_v17 = vld [vmem:[%s4645_s3 + $0x394] sm:$0xf]  ;;  %v2475_v18 = vld [vmem:[%s4645_s3 + $0x3ac] sm:$0xf0] }
  0xe3   :  { %1807 = vmatpush.bf16.msrb.mxu2 %v2614_v43  ;;  %1820 = vmatpush.bf16.msrb.mxu3 %v2838_v44  ;;  %v2697_v43 = vld [vmem:[%s4645_s3 + $0x550] sm:$0xf]  ;;  %v3080_v44 = vld [vmem:[%s4645_s3 + $0x568] sm:$0xf0] }
  0xe4   :  { %1783 = vmatpush.bf16.msrb.mxu0 %v2110_v53  ;;  %1796 = vmatpush.bf16.msrb.mxu1 %v2334_v54  ;;  %v2474_v53 = vor.u32 %v3024_v42, %v2473_v41  ;;  %v2698_v54 = vor.u32 %v3080_v44, %v2697_v43  ;;  %v2916_v41 = vld [vmem:[%s4645_s3 + $0x4c] sm:$0xf]  ;;  %v2055_v42 = vld [vmem:[%s4645_s3 + $0x64] sm:$0xf0]  ;;  %v2562_v43 = vor.u32 %v3042_v35, %v2559_v36  ;;  %v4480_v35 = vld [vmem:[%s4646_s4] sm:$0x7f] }
  0xe5   :  { %v2649_v36 = vld [vmem:[%s4645_s3 + $0x4e8] sm:$0xf] }
  0xe7   :  { %1808 = vmatpush.bf16.msrb.mxu2 %v2586_v57  ;;  %1821 = vmatpush.bf16.msrb.mxu3 %v2810_v58  ;;  %v2674_v57 = vor.u32 %v3070_v45, %v2671_v46  ;;  %v2898_v58 = vor.u32 %v3126_v49, %v2895_v50  ;;  %v2972_v45 = vld [vmem:[%s4645_s3 + $0x20c] sm:$0xf]  ;;  %v2279_v46 = vld [vmem:[%s4645_s3 + $0x224] sm:$0xf0]  ;;  %v3035_v49 = vld [vmem:[%s4645_s3 + $0x404] sm:$0xf] }
  0xe8   :  { %1784 = vmatpush.bf16.msrb.mxu0 %v2082_v1  ;;  %1797 = vmatpush.bf16.msrb.mxu1 %v2306_v2  ;;  %v2170_v1 = vor.u32 %v2944_v55, %v2167_v56  ;;  %v2394_v2 = vor.u32 %v3000_v59, %v2391_v60  ;;  %v2531_v50 = vld [vmem:[%s4645_s3 + $0x41c] sm:$0xf0]  ;;  %v2909_v55 = vld [vmem:[%s4645_s3 + $0x14] sm:$0xf]  ;;  %v2027_v56 = vld [vmem:[%s4645_s3 + $0x2c] sm:$0xf0] }
  0xe9   :  { %v2251_v60 = vld [vmem:[%s4645_s3 + $0x1ec] sm:$0xf0] }
  0xeb   :  { %1809 = vmatpush.bf16.msrb.mxu2 %v2558_v5  ;;  %1822 = vmatpush.bf16.msrb.mxu3 %v2782_v6  ;;  %v2646_v5 = vor.u32 %v3063_v61, %v2643_v62  ;;  %v2870_v6 = vor.u32 %v3119_v63, %v2867_v0  ;;  %v2229_v61 = vld [vmem:[%s4645_s3 + $0x1a0] sm:$0xf]  ;;  %v2962_v62 = vld [vmem:[%s4645_s3 + $0x1b8] sm:$0xf0] }
  0xec   :  { %1785 = vmatpush.bf16.msrb.mxu0 %v2054_v15  ;;  %1798 = vmatpush.bf16.msrb.mxu1 %v2278_v16  ;;  %v2142_v15 = vor.u32 %v2937_v3, %v2139_v4  ;;  %v2366_v16 = vor.u32 %v2993_v7, %v2363_v8  ;;  %v2453_v63 = vld [vmem:[%s4645_s3 + $0x360] sm:$0xf]  ;;  %v3018_v0 = vld [vmem:[%s4645_s3 + $0x378] sm:$0xf0]  ;;  %v3084_v3 = vld [vmem:[%s4645_s3 + $0x58c] sm:$0xf]  ;;  %v2230_v7 = vor.u32 %v2962_v62, %v2229_v61 }
  0xed   :  { %v2727_v4 = vld [vmem:[%s4645_s3 + $0x5a4] sm:$0xf0]  ;;  %v2454_v8 = vor.u32 %v3018_v0, %v2453_v63  ;;  %v2341_v63 = vld [vmem:[%s4645_s3 + $0x280] sm:$0xf]  ;;  %v2990_v0 = vld [vmem:[%s4645_s3 + $0x298] sm:$0xf0] }
  0xef   :  { %1810 = vmatpush.bf16.msrb.mxu2 %v2530_v20  ;;  %1823 = vmatpush.bf16.msrb.mxu3 %v2754_v21  ;;  %v2842_v20 = vor.u32 %v3112_v13, %v2839_v14  ;;  %v2986_v21 = vld [vmem:[%s4645_s3 + $0x27c] sm:$0xf]  ;;  %v2425_v13 = vld [vmem:[%s4645_s3 + $0x328] sm:$0xf] }
  0xf0   :  { %1786 = vmatpush.bf16.msrb.mxu0 %v2026_v31  ;;  %1799 = vmatpush.bf16.msrb.mxu1 %v2250_v32  ;;  %v2338_v28 = vor.u32 %v2986_v21, %v2335_v22  ;;  %v2590_v31 = vor.u32 %v3049_v23, %v2587_v24  ;;  %v2814_v32 = vor.u32 %v3105_v25, %v2811_v26  ;;  %v2677_v21 = vld [vmem:[%s4645_s3 + $0x520] sm:$0xf]  ;;  %v3074_v22 = vld [vmem:[%s4645_s3 + $0x538] sm:$0xf0] }
  0xf1   :  { %v2901_v23 = vld [vmem:[%s4645_s3 + $0x6e0] sm:$0xf]  ;;  %v3130_v24 = vld [vmem:[%s4645_s3 + $0x6f8] sm:$0xf0]  ;;  %v2202_v25 = vor.u32 %v2955_v12, %v2201_v9  ;;  %v2089_v12 = vld [vmem:[%s4645_s3 + $0x88] sm:$0xf] }
  0xf3   :  { %1811 = vmatpush.bf16.msrb.mxu2 %v2502_v38  ;;  %1824 = vmatpush.bf16.msrb.mxu3 %v2726_v39  ;;  %v2783_v38 = vld [vmem:[%s4645_s3 + $0x614] sm:$0xf0]  ;;  %v2086_v39 = vor.u32 %v2923_v29, %v2083_v30  ;;  %v2173_v29 = vld [vmem:[%s4645_s3 + $0x130] sm:$0xf]  ;;  %v2948_v30 = vld [vmem:[%s4645_s3 + $0x148] sm:$0xf0] }
  0xf4   :  { %1831 = vmatpush.bf16.msra.mxu0 %v2226_v33  ;;  %1844 = vmatpush.bf16.msra.mxu1 %v2450_v34  ;;  %v2979_v33 = vld [vmem:[%s4645_s3 + $0x244] sm:$0xf]  ;;  %v2307_v34 = vld [vmem:[%s4645_s3 + $0x25c] sm:$0xf0]  ;;  %v2786_v44 = vor.u32 %v3098_v37, %v2783_v38  ;;  %v2873_v38 = vld [vmem:[%s4645_s3 + $0x6a8] sm:$0xf] }
  0xf5   :  { %1787 = vmatmul.bf16.vlgmr.msrb.gmra.mxu0 %v3649_v47  ;;  %1800 = vmatmul.bf16.vlgmr.msrb.gmra.mxu1 %v3651_v48  ;;  %v2310_v40 = vor.u32 %v2979_v33, %v2307_v34  ;;  %v2902_v33 = vor.u32 %v3130_v24, %v2901_v23  ;;  %v3004_v34 = vld [vmem:[%s4645_s3 + $0x308] sm:$0xf0]  ;;  %v3067_v37 = vld [vmem:[%s4645_s3 + $0x500] sm:$0xf0] }
  0xf7   :  { %1812 = vmatpush.bf16.msrb.mxu2 %v2474_v53  ;;  %1825 = vmatpush.bf16.msrb.mxu3 %v2698_v54  ;;  %v2058_v53 = vor.u32 %v2916_v41, %v2055_v42  ;;  %v2282_v54 = vor.u32 %v2972_v45, %v2279_v46  ;;  %v405_v42 = vperm.slane %v4480_v35, 0  ;;  %v2145_v45 = vld [vmem:[%s4645_s3 + $0xf8] sm:$0xf]  ;;  %v2941_v46 = vld [vmem:[%s4645_s3 + $0x110] sm:$0xf0] }
  0xf8   :  { %1832 = vmatpush.bf16.msra.mxu0 %v2198_v51  ;;  %1845 = vmatpush.bf16.msra.mxu1 %v2422_v52  ;;  %v3091_v51 = vld [vmem:[%s4645_s3 + $0x5c4] sm:$0xf]  ;;  %v2755_v52 = vld [vmem:[%s4645_s3 + $0x5dc] sm:$0xf0] }
  0xf9   :  { %v2758_v59 = vor.u32 %v3091_v51, %v2755_v52  ;;  %v2369_v51 = vld [vmem:[%s4645_s3 + $0x2b8] sm:$0xf]  ;;  %v2997_v52 = vld [vmem:[%s4645_s3 + $0x2d0] sm:$0xf0] }
  0xfa   :  { %1813 = vmatmul.bf16.vlgmr.msrb.gmra.mxu2 %v3691_v10  ;;  %1826 = vmatmul.bf16.vlgmr.msrb.gmra.mxu3 %v3693_v11 }
  0xfb   :  { %1857 = vmatpush.bf16.msra.mxu2 %v2674_v57  ;;  %1870 = vmatpush.bf16.msra.mxu3 %v2898_v58  ;;  %v2965_v57 = vld [vmem:[%s4645_s3 + $0x1d4] sm:$0xf]  ;;  %v2534_v58 = vor.u32 %v3035_v49, %v2531_v50  ;;  %v2650_v49 = vor.u32 %v3067_v37, %v2649_v36  ;;  %v3039_v36 = vld [vmem:[%s4645_s3 + $0x420] sm:$0xf0]  ;;  %v2761_v37 = vld [vmem:[%s4645_s3 + $0x5c8] sm:$0xf] }
  0xfc   :  { %1833 = vmatpush.bf16.msra.mxu0 %v2170_v1  ;;  %1846 = vmatpush.bf16.msra.mxu1 %v2394_v2  ;;  %v3028_v1 = vld [vmem:[%s4645_s3 + $0x3cc] sm:$0xf]  ;;  %v2503_v2 = vld [vmem:[%s4645_s3 + $0x3e4] sm:$0xf0] }
  0xfd   :  { %v2506_v14 = vor.u32 %v3028_v1, %v2503_v2  ;;  %v2593_v1 = vld [vmem:[%s4645_s3 + $0x478] sm:$0xf] }
  0xff   :  { %1858 = vmatpush.bf16.msra.mxu2 %v2646_v5  ;;  %1871 = vmatpush.bf16.msra.mxu3 %v2870_v6  ;;  %v2030_v5 = vor.u32 %v2909_v55, %v2027_v56  ;;  %v2254_v6 = vor.u32 %v2965_v57, %v2251_v60  ;;  %v2845_v55 = vld [vmem:[%s4645_s3 + $0x670] sm:$0xf]  ;;  %v3116_v56 = vld [vmem:[%s4645_s3 + $0x688] sm:$0xf0]  ;;  %v2146_v57 = vor.u32 %v2941_v46, %v2145_v45  ;;  %v2934_v60 = vld [vmem:[%s4645_s3 + $0xd8] sm:$0xf0] }
 0x100   :  { %1834 = vmatpush.bf16.msra.mxu0 %v2142_v15  ;;  %1847 = vmatpush.bf16.msra.mxu1 %v2366_v16  ;;  %v2730_v15 = vor.u32 %v3084_v3, %v2727_v4  ;;  %v3011_v16 = vld [vmem:[%s4645_s3 + $0x340] sm:$0xf0]  ;;  %v2846_v62 = vor.u32 %v3116_v56, %v2845_v55  ;;  %v3053_v3 = vld [vmem:[%s4645_s3 + $0x490] sm:$0xf0]  ;;  %v2817_v4 = vld [vmem:[%s4645_s3 + $0x638] sm:$0xf] }
 0x101   :  { %v2426_v26 = vor.u32 %v3011_v16, %v2425_v13  ;;  %v2927_v13 = vld [vmem:[%s4645_s3 + $0xa0] sm:$0xf0]  ;;  %v2313_v16 = vld [vmem:[%s4645_s3 + $0x248] sm:$0xf]  ;;  %v2733_v55 = vld [vmem:[%s4645_s3 + $0x590] sm:$0xf] }
 0x102   :  { %v2090_v23 = vor.u32 %v2927_v13, %v2089_v12  ;;  %v3088_v56 = vld [vmem:[%s4645_s3 + $0x5a8] sm:$0xf0] }
 0x103   :  { %1859 = vmatpush.bf16.msra.mxu2 %v2618_v19  ;;  %1872 = vmatpush.bf16.msra.mxu3 %v2842_v20  ;;  %v3077_v19 = vld [vmem:[%s4645_s3 + $0x554] sm:$0xf]  ;;  %v2699_v20 = vld [vmem:[%s4645_s3 + $0x56c] sm:$0xf0] }
 0x104   :  { %1835 = vmatpush.bf16.msra.mxu0 %v2114_v27  ;;  %1848 = vmatpush.bf16.msra.mxu1 %v2338_v28  ;;  %v2478_v27 = vor.u32 %v3021_v17, %v2475_v18  ;;  %v2702_v28 = vor.u32 %v3077_v19, %v2699_v20  ;;  %v2983_v17 = vld [vmem:[%s4645_s3 + $0x260] sm:$0xf0]  ;;  %v2565_v18 = vld [vmem:[%s4645_s3 + $0x440] sm:$0xf]  ;;  %v3046_v20 = vld [vmem:[%s4645_s3 + $0x458] sm:$0xf0] }
 0x105   :  { %v2314_v24 = vor.u32 %v2983_v17, %v2313_v16 }
 0x107   :  { %1860 = vmatpush.bf16.msra.mxu2 %v2590_v31  ;;  %1873 = vmatpush.bf16.msra.mxu3 %v2814_v32  ;;  %v2397_v31 = vld [vmem:[%s4645_s3 + $0x2f0] sm:$0xf]  ;;  %v2678_v32 = vor.u32 %v3074_v22, %v2677_v21  ;;  %v2789_v21 = vld [vmem:[%s4645_s3 + $0x600] sm:$0xf]  ;;  %v3102_v22 = vld [vmem:[%s4645_s3 + $0x618] sm:$0xf0] }
 0x108   :  { %1836 = vmatpush.bf16.msra.mxu0 %v2086_v39  ;;  %1849 = vmatpush.bf16.msra.mxu1 %v2310_v40  ;;  %v3123_v39 = vld [vmem:[%s4645_s3 + $0x6c0] sm:$0xf0]  ;;  %v2174_v40 = vor.u32 %v2948_v30, %v2173_v29  ;;  %v2398_v41 = vor.u32 %v3004_v34, %v2397_v31  ;;  %v2566_v29 = vor.u32 %v3046_v20, %v2565_v18  ;;  %v2285_v31 = vld [vmem:[%s4645_s3 + $0x210] sm:$0xf] }
 0x109   :  { %v2874_v50 = vor.u32 %v3123_v39, %v2873_v38  ;;  %v2790_v30 = vor.u32 %v3102_v22, %v2789_v21  ;;  %v3095_v38 = vld [vmem:[%s4645_s3 + $0x5e0] sm:$0xf0] }
 0x10b   :  { %1861 = vmatpush.bf16.msra.mxu2 %v2562_v43  ;;  %1874 = vmatpush.bf16.msra.mxu3 %v2786_v44 }
 0x10c   :  { %1837 = vmatpush.bf16.msra.mxu0 %v2058_v53  ;;  %1850 = vmatpush.bf16.msra.mxu1 %v2282_v54  ;;  %v2621_v53 = vld [vmem:[%s4645_s3 + $0x4b0] sm:$0xf]  ;;  %v3060_v54 = vld [vmem:[%s4645_s3 + $0x4c8] sm:$0xf0] }
 0x10d   :  { %v2622_v61 = vor.u32 %v3060_v54, %v2621_v53  ;;  %v3032_v53 = vld [vmem:[%s4645_s3 + $0x3e8] sm:$0xf0] }
 0x10f   :  { %1862 = vmatpush.bf16.msra.mxu2 %v2534_v58  ;;  %1875 = vmatpush.bf16.msra.mxu3 %v2758_v59  ;;  %v1580_v43 = vpop.f32.mrf.mxu0  ;;  %v1593_v44 = vpop.f32.mrf.mxu1  ;;  %v2370_v58 = vor.u32 %v2997_v52, %v2369_v51  ;;  %v2117_v59 = vld [vmem:[%s4645_s3 + $0xc0] sm:$0xf]  ;;  %v2969_v51 = vld [vmem:[%s4645_s3 + $0x1f0] sm:$0xf0]  ;;  %v2509_v52 = vld [vmem:[%s4645_s3 + $0x3d0] sm:$0xf] }
 0x110   :  { %1838 = vmatpush.bf16.msra.mxu0 %v2030_v5  ;;  %1851 = vmatpush.bf16.msra.mxu1 %v2254_v6  ;;  %v1581_v2 = vadd.f32 %v1580_v43, %v405_v42  ;;  %v3109_v5 = vld [vmem:[%s4645_s3 + $0x650] sm:$0xf0]  ;;  %v2118_v6 = vor.u32 %v2934_v60, %v2117_v59  ;;  %v2033_v42 = vld [vmem:[%s4645_s3 + $0x18] sm:$0xf] }
 0x111   :  { %v2913_v43 = vld [vmem:[%s4645_s3 + $0x30] sm:$0xf0] }
 0x112   :  { %v1594_v19 = vadd.f32 %v1593_v44, %v1581_v2  ;;  %v2257_v44 = vld [vmem:[%s4645_s3 + $0x1d8] sm:$0xf] }
 0x113   :  { %1863 = vmatpush.bf16.msra.mxu2 %v2506_v14  ;;  %1876 = vmatpush.bf16.msra.mxu3 %v2730_v15  ;;  %v2594_v14 = vor.u32 %v3053_v3, %v2593_v1  ;;  %v2818_v15 = vor.u32 %v3109_v5, %v2817_v4  ;;  %v2258_v59 = vor.u32 %v2969_v51, %v2257_v44  ;;  %v3025_v1 = vld [vmem:[%s4645_s3 + $0x3b0] sm:$0xf0]  ;;  %v2705_v2 = vld [vmem:[%s4645_s3 + $0x558] sm:$0xf] }
 0x114   :  { %1883 = vmatpush.bf16.msrb.mxu0 %v2230_v7  ;;  %1896 = vmatpush.bf16.msrb.mxu1 %v2454_v8  ;;  %v2342_v7 = vor.u32 %v2990_v0, %v2341_v63  ;;  %v2734_v63 = vor.u32 %v3088_v56, %v2733_v55  ;;  %v2481_v0 = vld [vmem:[%s4645_s3 + $0x398] sm:$0xf]  ;;  %v3081_v3 = vld [vmem:[%s4645_s3 + $0x570] sm:$0xf0] }
 0x115   :  { %1839 = vmatmul.bf16.vlgmr.msra.gmra.mxu0 %v3649_v47  ;;  %1852 = vmatmul.bf16.vlgmr.msra.gmra.mxu1 %v3651_v48 }
 0x117   :  { %1864 = vmatpush.bf16.msra.mxu2 %v2478_v27  ;;  %1877 = vmatpush.bf16.msra.mxu3 %v2702_v28  ;;  %v1582_v8 = vpop.f32.mrf.mxu0  ;;  %v1595_v9 = vpop.f32.mrf.mxu1 }
 0x118   :  { %1884 = vmatpush.bf16.msrb.mxu0 %v2202_v25  ;;  %1897 = vmatpush.bf16.msrb.mxu1 %v2426_v26  ;;  %v2061_v25 = vld [vmem:[%s4645_s3 + $0x50] sm:$0xf]  ;;  %v2920_v26 = vld [vmem:[%s4645_s3 + $0x68] sm:$0xf0]  ;;  %v2706_v8 = vor.u32 %v3081_v3, %v2705_v2 }
 0x11a   :  { %1865 = vmatmul.bf16.vlgmr.msra.gmra.mxu2 %v3691_v10  ;;  %1878 = vmatmul.bf16.vlgmr.msra.gmra.mxu3 %v3693_v11 }
 0x11b   :  { %1909 = vmatpush.bf16.msrb.mxu2 %v2678_v32  ;;  %1922 = vmatpush.bf16.msrb.mxu3 %v2902_v33  ;;  %v2976_v32 = vld [vmem:[%s4645_s3 + $0x228] sm:$0xf0]  ;;  %v2537_v33 = vld [vmem:[%s4645_s3 + $0x408] sm:$0xf]  ;;  %s3172_s3 = smov [#allocation2]  }
 0x11c   :  { %1885 = vmatpush.bf16.msrb.mxu0 %v2174_v40  ;;  %1898 = vmatpush.bf16.msrb.mxu1 %v2398_v41  ;;  %v2062_v40 = vor.u32 %v2920_v26, %v2061_v25  ;;  %v2286_v41 = vor.u32 %v2976_v32, %v2285_v31  ;;  %s1976_s23 = sshll.u32 %s3172_s3, 4  ;;  %s1977_s23 = int_to_ptr.vmem [resolvable:$true] %s1976_s23 }
 0x11d   :  { %v1606_v27 = vpop.f32.mrf.mxu2  ;;  %v1619_v28 = vpop.f32.mrf.mxu3 }
 0x11e   :  { %v1607_v34 = vadd.f32 %v1606_v27, %v1594_v19 }
 0x11f   :  { %1910 = vmatpush.bf16.msrb.mxu2 %v2650_v49  ;;  %1923 = vmatpush.bf16.msrb.mxu3 %v2874_v50  ;;  %v1632_v45 = vpop.f32.mrf.mxu0  ;;  %v1645_v46 = vpop.f32.mrf.mxu1  ;;  %v2538_v49 = vor.u32 %v3039_v36, %v2537_v33  ;;  %v2762_v50 = vor.u32 %v3095_v38, %v2761_v37 }
 0x120   :  { %1886 = vmatpush.bf16.msrb.mxu0 %v2146_v57  ;;  %1899 = vmatpush.bf16.msrb.mxu1 %v2370_v58  ;;  %v1620_v39 = vadd.f32 %v1619_v28, %v1607_v34  ;;  %v406_v57 = vperm.slane %v4480_v35, 1  ;;  %v2034_v58 = vor.u32 %v2913_v43, %v2033_v42 }
 0x122   :  { %v1935_v54 = vmul.f32 0.5, %v1620_v39  ;;  %v1633_v4 = vadd.f32 %v1632_v45, %v406_v57 }
 0x123   :  { %1911 = vmatpush.bf16.msrb.mxu2 %v2622_v61  ;;  %1924 = vmatpush.bf16.msrb.mxu3 %v2846_v62  ;;  %v2510_v62 = vor.u32 %v3032_v53, %v2509_v52 }
 0x124   :  { %1887 = vmatpush.bf16.msrb.mxu0 %v2118_v6  ;;  %1900 = vmatpush.bf16.msrb.mxu1 %v2342_v7  ;;  %3132 = vtanh.f32 %v1935_v54  ;;  %v2482_v7 = vor.u32 %v3025_v1, %v2481_v0  ;;  %v1646_v13 = vadd.f32 %v1645_v46, %v1633_v4 }
 0x125   :  { %v1608_v60 = vpop.f32.mrf.mxu2  ;;  %v1621_v61 = vpop.f32.mrf.mxu3 }
 0x126   :  { %v409_v60 = vperm.slane %v4480_v35, 4 }
 0x127   :  { %1912 = vmatpush.bf16.msrb.mxu2 %v2594_v14  ;;  %1925 = vmatpush.bf16.msrb.mxu3 %v2818_v15  ;;  %v1634_v5 = vpop.f32.mrf.mxu0  ;;  %v1647_v6 = vpop.f32.mrf.mxu1 }
 0x128   :  { %1888 = vmatpush.bf16.msrb.mxu0 %v2090_v23  ;;  %1901 = vmatpush.bf16.msrb.mxu1 %v2314_v24 }
 0x12a   :  { %v3133_v9 = vpop.eup %3132 }
 0x12b   :  { %1913 = vmatpush.bf16.msrb.mxu2 %v2566_v29  ;;  %1926 = vmatpush.bf16.msrb.mxu3 %v2790_v30  ;;  %v1949_v12 = vmul.f32 0.5, %v3133_v9 }
 0x12c   :  { %1889 = vmatpush.bf16.msrb.mxu0 %v2062_v40  ;;  %1902 = vmatpush.bf16.msrb.mxu1 %v2286_v41  ;;  %v408_v41 = vperm.slane %v4480_v35, 3 }
 0x12d   :  { %v1956_v14 = vadd.f32 0.5, %v1949_v12  ;;  %v1658_v15 = vpop.f32.mrf.mxu2  ;;  %v1671_v16 = vpop.f32.mrf.mxu3 }
 0x12e   :  { %v1659_v17 = vadd.f32 %v1658_v15, %v1646_v13  ;;  %v410_v15 = vperm.slane %v4480_v35, 5 }
 0x12f   :  { %1914 = vmatpush.bf16.msrb.mxu2 %v2538_v49  ;;  %1927 = vmatpush.bf16.msrb.mxu3 %v2762_v50  ;;  %1963 = vst [vmem:[#allocation2] sm:$0xff] %v1956_v14 }
 0x130   :  { %1890 = vmatpush.bf16.msrb.mxu0 %v2034_v58  ;;  %1903 = vmatpush.bf16.msrb.mxu1 %v2258_v59  ;;  %v1672_v18 = vadd.f32 %v1671_v16, %v1659_v17 }
 0x132   :  { %v1684_v19 = vpop.f32.mrf.mxu0  ;;  %v1697_v20 = vpop.f32.mrf.mxu1  ;;  %v1936_v21 = vmul.f32 0.5, %v1672_v18 }
 0x133   :  { %1915 = vmatpush.bf16.msrb.mxu2 %v2510_v62  ;;  %1928 = vmatpush.bf16.msrb.mxu3 %v2734_v63 }
 0x134   :  { %1891 = vmatmul.bf16.vlgmr.msrb.gmra.mxu0 %v3649_v47  ;;  %1904 = vmatmul.bf16.vlgmr.msrb.gmra.mxu1 %v3651_v48  ;;  %3134 = vtanh.f32 %v1936_v21  ;;  %v407_v47 = vperm.slane %v4480_v35, 2 }
 0x135   :  { %v1660_v48 = vpop.f32.mrf.mxu2  ;;  %v1673_v22 = vpop.f32.mrf.mxu3 }
 0x136   :  { %v1685_v23 = vadd.f32 %v1684_v19, %v407_v47 }
 0x137   :  { %1916 = vmatpush.bf16.msrb.mxu2 %v2482_v7  ;;  %1929 = vmatpush.bf16.msrb.mxu3 %v2706_v8 }
 0x138   :  { %v1698_v29 = vadd.f32 %v1697_v20, %v1685_v23 }
 0x13a   :  { %1917 = vmatmul.bf16.vlgmr.msrb.gmra.mxu2 %v3691_v10  ;;  %1930 = vmatmul.bf16.vlgmr.msrb.gmra.mxu3 %v3693_v11  ;;  %v1686_v24 = vpop.f32.mrf.mxu0  ;;  %v1699_v25 = vpop.f32.mrf.mxu1 }
 0x13b   :  { %v3135_v26 = vpop.eup %3134 }
 0x13c   :  { %v1950_v27 = vmul.f32 0.5, %v3135_v26 }
 0x13d   :  { %v1710_v30 = vpop.f32.mrf.mxu2  ;;  %v1723_v31 = vpop.f32.mrf.mxu3 }
 0x13e   :  { %v1957_v28 = vadd.f32 0.5, %v1950_v27  ;;  %v1711_v10 = vadd.f32 %v1710_v30, %v1698_v29  ;;  %v411_v30 = vperm.slane %v4480_v35, 6 }
 0x140   :  { %1964 = vst [vmem:[#allocation2 + $0x8] sm:$0xff] %v1957_v28  ;;  %v1724_v11 = vadd.f32 %v1723_v31, %v1711_v10 }
 0x142   :  { %v1937_v32 = vmul.f32 0.5, %v1724_v11 }
 0x144   :  { %3136 = vtanh.f32 %v1937_v32 }
 0x145   :  { %v1712_v33 = vpop.f32.mrf.mxu2  ;;  %v1725_v34 = vpop.f32.mrf.mxu3 }
 0x14a   :  { %v3137_v36 = vpop.eup %3136 }
 0x14b   :  { %v1951_v37 = vmul.f32 0.5, %v3137_v36 }
 0x14d   :  { %v1958_v38 = vadd.f32 0.5, %v1951_v37 }
 0x14f   :  { %1965 = vst [vmem:[#allocation2 + $0x10] sm:$0xff] %v1958_v38 }
 0x152   :  { %v1736_v39 = vpop.f32.mrf.mxu0  ;;  %v1749_v40 = vpop.f32.mrf.mxu1 }
 0x153   :  { %v1737_v42 = vadd.f32 %v1736_v39, %v408_v41 }
 0x155   :  { %v1750_v45 = vadd.f32 %v1749_v40, %v1737_v42 }
 0x15a   :  { %v1738_v43 = vpop.f32.mrf.mxu0  ;;  %v1751_v44 = vpop.f32.mrf.mxu1 }
 0x15d   :  { %v1762_v46 = vpop.f32.mrf.mxu2  ;;  %v1775_v49 = vpop.f32.mrf.mxu3 }
 0x15e   :  { %v1763_v50 = vadd.f32 %v1762_v46, %v1750_v45 }
 0x160   :  { %v1776_v51 = vadd.f32 %v1775_v49, %v1763_v50 }
 0x162   :  { %v1938_v52 = vmul.f32 0.5, %v1776_v51 }
 0x164   :  { %3138 = vtanh.f32 %v1938_v52 }
 0x165   :  { %v1764_v53 = vpop.f32.mrf.mxu2  ;;  %v1777_v54 = vpop.f32.mrf.mxu3 }
 0x16a   :  { %v3139_v55 = vpop.eup %3138 }
 0x16b   :  { %v1952_v56 = vmul.f32 0.5, %v3139_v55 }
 0x16d   :  { %v1959_v57 = vadd.f32 0.5, %v1952_v56 }
 0x16f   :  { %1966 = vst [vmem:[#allocation2 + $0x18] sm:$0xff] %v1959_v57 }
 0x172   :  { %v1788_v58 = vpop.f32.mrf.mxu0  ;;  %v1801_v59 = vpop.f32.mrf.mxu1 }
 0x173   :  { %v1789_v61 = vadd.f32 %v1788_v58, %v409_v60 }
 0x175   :  { %v1802_v0 = vadd.f32 %v1801_v59, %v1789_v61 }
 0x17a   :  { %v1790_v62 = vpop.f32.mrf.mxu0  ;;  %v1803_v63 = vpop.f32.mrf.mxu1 }
 0x17d   :  { %v1814_v1 = vpop.f32.mrf.mxu2  ;;  %v1827_v2 = vpop.f32.mrf.mxu3 }
 0x17e   :  { %v1815_v3 = vadd.f32 %v1814_v1, %v1802_v0 }
 0x180   :  { %v1828_v4 = vadd.f32 %v1827_v2, %v1815_v3 }
 0x182   :  { %v1939_v5 = vmul.f32 0.5, %v1828_v4 }
 0x184   :  { %3140 = vtanh.f32 %v1939_v5 }
 0x185   :  { %v1816_v6 = vpop.f32.mrf.mxu2  ;;  %v1829_v7 = vpop.f32.mrf.mxu3 }
 0x18a   :  { %v3141_v8 = vpop.eup %3140 }
 0x18b   :  { %v1953_v9 = vmul.f32 0.5, %v3141_v8 }
 0x18d   :  { %v1960_v12 = vadd.f32 0.5, %v1953_v9 }
 0x18f   :  { %1967 = vst [vmem:[#allocation2 + $0x20] sm:$0xff] %v1960_v12 }
 0x192   :  { %v1840_v13 = vpop.f32.mrf.mxu0  ;;  %v1853_v14 = vpop.f32.mrf.mxu1 }
 0x193   :  { %v1841_v16 = vadd.f32 %v1840_v13, %v410_v15 }
 0x195   :  { %v1854_v19 = vadd.f32 %v1853_v14, %v1841_v16 }
 0x19a   :  { %v1842_v17 = vpop.f32.mrf.mxu0  ;;  %v1855_v18 = vpop.f32.mrf.mxu1 }
 0x19d   :  { %v1866_v20 = vpop.f32.mrf.mxu2  ;;  %v1879_v21 = vpop.f32.mrf.mxu3 }
 0x19e   :  { %v1867_v47 = vadd.f32 %v1866_v20, %v1854_v19 }
 0x1a0   :  { %v1880_v48 = vadd.f32 %v1879_v21, %v1867_v47 }
 0x1a2   :  { %v1940_v22 = vmul.f32 0.5, %v1880_v48 }
 0x1a4   :  { %3142 = vtanh.f32 %v1940_v22 }
 0x1a5   :  { %v1868_v23 = vpop.f32.mrf.mxu2  ;;  %v1881_v24 = vpop.f32.mrf.mxu3 }
 0x1aa   :  { %v3143_v25 = vpop.eup %3142 }
 0x1ab   :  { %v1954_v26 = vmul.f32 0.5, %v3143_v25 }
 0x1ad   :  { %v1961_v27 = vadd.f32 0.5, %v1954_v26 }
 0x1af   :  { %1968 = vst [vmem:[#allocation2 + $0x28] sm:$0xff] %v1961_v27 }
 0x1b1   :  { %v1892_v28 = vpop.f32.mrf.mxu0  ;;  %v1905_v29 = vpop.f32.mrf.mxu1 }
 0x1b2   :  { %v1893_v31 = vadd.f32 %v1892_v28, %v411_v30 }
 0x1b4   :  { %v1906_v32 = vadd.f32 %v1905_v29, %v1893_v31 }
 0x1b9   :  { %v1894_v10 = vpop.f32.mrf.mxu0  ;;  %v1907_v11 = vpop.f32.mrf.mxu1 }
 0x1bd   :  { %v1918_v33 = vpop.f32.mrf.mxu2  ;;  %v1931_v34 = vpop.f32.mrf.mxu3 }
 0x1be   :  { %v1919_v36 = vadd.f32 %v1918_v33, %v1906_v32 }
 0x1c0   :  { %v1932_v37 = vadd.f32 %v1931_v34, %v1919_v36 }
 0x1c2   :  { %v1941_v38 = vmul.f32 0.5, %v1932_v37 }
 0x1c4   :  { %3144 = vtanh.f32 %v1941_v38 }
 0x1c5   :  { %v1920_v39 = vpop.f32.mrf.mxu2  ;;  %v1933_v40 = vpop.f32.mrf.mxu3 }
 0x1ca   :  { %v3145_v41 = vpop.eup %3144 }
 0x1cb   :  { %v1955_v35 = vmul.f32 0.5, %v3145_v41 }
 0x1cd   :  { %v1962_v42 = vadd.f32 0.5, %v1955_v35 }
 0x1cf   :  { %1970 = vst.msk [vmem:[#allocation2 + $0x30] sm:$0xff] %vm1969_vm2, %v1962_v42 }
 0x1d0   :  { %1981 = dma.vmem_to_hbm [thread:$0]  %s1977_s23, 896, %s1979_s26, [#allocation3]  }
 0x1d1   :  { %3170 = dma.done.wait [#allocation3], 896  }
 0x1d2   :  { %3171 = vsyncadd [#allocation3], 4294966400 }
 0x1d3   :  { %1986 = vsyncpa [#allocation3], 1 }

</bundles_post_ra>
